<compile_context>
chip_gen: v6e
topology: v6e:2x2x1
jax: 0.10.0
libtpu: 0.0.40
codegen_flags: <defaults>
</compile_context>

<pallas_src>
import jax
import jax.numpy as jnp
from jax.experimental import pallas as pl
from jax.experimental.pallas import tpu as pltpu

# ---------------- configuration (small, consistent with the module) ----------------
E = 32          # embed_dim
HD = 16         # head_dim
H = 4           # num_heads
INNER = H * HD  # 64 != embed_dim -> both attentions use an out_proj Linear
MLPS = 64       # mlp_size
KV = 48         # kv_dim (cross-attention keys/values)
B = 2           # batch
L = 8           # num query tokens
LK = 16         # num encoder tokens (feats)
BH = B * H
EPS = 1e-6      # module uses nn.LayerNorm(..., eps=1e-06)


# ---------------------------- in-kernel helpers -------------------------------------
def _layernorm(x, w, b):
    mu = jnp.mean(x, axis=-1, keepdims=True)
    var = jnp.mean(jnp.square(x - mu), axis=-1, keepdims=True)
    return (x - mu) * jax.lax.rsqrt(var + EPS) * w + b


def _bcast_heads(x2d, n_tok):
    """(B*n_tok, D) -> (B*H, n_tok, D): replicate each batch element across heads.

    Only leading-dim reshapes + a major-dim broadcast -> no lane relayout."""
    d = x2d.shape[-1]
    x4 = jnp.broadcast_to(x2d.reshape(B, 1, n_tok, d), (B, H, n_tok, d))
    return x4.reshape(BH, n_tok, d)


def _mh_attention(qh, kh, vh, wo_bh):
    """Head-batched attention.

    qh: (BH, Lq, HD), kh/vh: (BH, Lk, HD), wo_bh: (BH, HD, E)  ->  (B*Lq, E).
    Scale is already folded into the Q projection weights."""
    s = jnp.einsum('bqd,bkd->bqk', qh, kh, preferred_element_type=jnp.float32)
    m = jnp.max(s, axis=-1, keepdims=True)
    e = jnp.exp(s - m)
    p = e * pl.reciprocal(jnp.sum(e, axis=-1, keepdims=True))      # EUP reciprocal
    o = jnp.einsum('bqk,bkd->bqd', p, vh, preferred_element_type=jnp.float32)
    # out_proj absorbed per head: (BH, Lq, HD) @ (BH, HD, E) -> (BH, Lq, E)
    oe = jnp.einsum('bqd,bde->bqe', o, wo_bh, preferred_element_type=jnp.float32)
    o4 = oe.reshape(B, H, -1, E)
    out = o4[:, 0]
    for h in range(1, H):                       # merge_heads == sum over heads
        out = out + o4[:, h]
    return out.reshape(-1, E)


# ------------------------------- fused kernel ---------------------------------------
def decoder_kernel(q_ref, f_ref,
                   vec_e_ref, ln_kv_ref, b1_ref,
                   w_qkv_s_ref, wo_s_ref,
                   w_q_c_ref, w_kv_c_ref, wo_c_ref,
                   w1_ref, w2_ref,
                   out_ref):
    x = q_ref[...]            # (B*L, E)
    feats = f_ref[...]        # (B*LK, KV)

    vec_e = vec_e_ref[...]    # (9, E) packed LN params + E-sized biases
    ln_att_w, ln_att_b = vec_e[0:1], vec_e[1:2]
    ln_cq_w, ln_cq_b = vec_e[2:3], vec_e[3:4]
    ln_mlp_w, ln_mlp_b = vec_e[4:5], vec_e[5:6]
    bo_s, bo_c, b2 = vec_e[6:7], vec_e[7:8], vec_e[8:9]
    ln_kv = ln_kv_ref[...]    # (2, KV)

    # ---- self-attention branch ----
    xn = _layernorm(x, ln_att_w, ln_att_b)
    xh = _bcast_heads(xn, L)                                            # (BH, L, E)
    qkv = jnp.einsum('bte,bef->btf', xh, w_qkv_s_ref[...],
                     preferred_element_type=jnp.float32)                # (BH, L, 3*HD)
    sa = _mh_attention(qkv[..., :HD], qkv[..., HD:2 * HD], qkv[..., 2 * HD:],
                       wo_s_ref[...])                                   # (B*L, E)
    y = sa + bo_s + x

    # ---- cross-attention branch ----
    qn = _layernorm(y, ln_cq_w, ln_cq_b)
    fn = _layernorm(feats, ln_kv[0:1], ln_kv[1:2])
    qh = jnp.einsum('bte,bed->btd', _bcast_heads(qn, L), w_q_c_ref[...],
                    preferred_element_type=jnp.float32)                 # (BH, L, HD)
    kvp = jnp.einsum('bte,bef->btf', _bcast_heads(fn, LK), w_kv_c_ref[...],
                     preferred_element_type=jnp.float32)                # (BH, LK, 2*HD)
    ca = _mh_attention(qh, kvp[..., :HD], kvp[..., HD:], wo_c_ref[...])  # (B*L, E)
    z = ca + bo_c + y

    # ---- MLP branch ----
    on = _layernorm(z, ln_mlp_w, ln_mlp_b)
    h1 = jnp.dot(on, w1_ref[...], preferred_element_type=jnp.float32) + b1_ref[...]
    h1 = jax.nn.gelu(h1, approximate=True)
    o = jnp.dot(h1, w2_ref[...], preferred_element_type=jnp.float32) + b2
    out_ref[...] = (o + z).astype(out_ref.dtype)


# --------------------------- wrapper-side weight packing ----------------------------
def _per_head_in(w):
    """torch Linear weight (INNER, D_in) -> per-head (H, D_in, HD)."""
    return jnp.transpose(w.reshape(H, HD, -1), (0, 2, 1))


def _rep_b(w):
    """(H, r, c) -> (B*H, r, c): replicate head weights across batch."""
    return jnp.broadcast_to(w[None], (B,) + w.shape).reshape((B * H,) + w.shape[1:])


def _pack_params(params):
    (ln_att_w, ln_att_b,
     wq_s, wk_s, wv_s, wo_s, bo_s,
     ln_cq_w, ln_cq_b, ln_ckv_w, ln_ckv_b,
     wq_c, wk_c, wv_c, wo_c, bo_c,
     ln_mlp_w, ln_mlp_b,
     w1, b1, w2, b2) = params
    scale = HD ** (-0.5)

    # Packed LN params + E-sized biases -> a single (9, E) slab.
    vec_e = jnp.concatenate([
        ln_att_w.reshape(1, E), ln_att_b.reshape(1, E),
        ln_cq_w.reshape(1, E), ln_cq_b.reshape(1, E),
        ln_mlp_w.reshape(1, E), ln_mlp_b.reshape(1, E),
        bo_s.reshape(1, E), bo_c.reshape(1, E), b2.reshape(1, E)], axis=0)
    ln_kv = jnp.concatenate([ln_ckv_w.reshape(1, KV), ln_ckv_b.reshape(1, KV)], axis=0)
    b1_2d = b1.reshape(1, MLPS)

    # Self-attn: fused, pre-transposed, per-head QKV (q pre-scaled) + per-head out_proj.
    w_qkv_s = _rep_b(jnp.concatenate(
        [_per_head_in(wq_s) * scale, _per_head_in(wk_s), _per_head_in(wv_s)], axis=-1))
    wo_s_h = _rep_b(wo_s.T.reshape(H, HD, E))
    # Cross-attn: per-head Q (scaled) and fused K/V weights + per-head out_proj.
    w_q_c = _rep_b(_per_head_in(wq_c) * scale)
    w_kv_c = _rep_b(jnp.concatenate([_per_head_in(wk_c), _per_head_in(wv_c)], axis=-1))
    wo_c_h = _rep_b(wo_c.T.reshape(H, HD, E))
    # MLP: pre-transposed to (in, out).
    w1_t = w1.T
    w2_t = w2.T
    return (vec_e, ln_kv, b1_2d, w_qkv_s, wo_s_h, w_q_c, w_kv_c, wo_c_h, w1_t, w2_t)


# --------------------------------- wrapper ------------------------------------------
@jax.jit
def transformer_decoder(queries, feats, params):
    b, l, e = queries.shape
    lk, kvd = feats.shape[1], feats.shape[2]
    packed = _pack_params(params)              # trace-time packing (one-off under jit)
    q2d = queries.reshape(b * l, e)
    f2d = feats.reshape(b * lk, kvd)

    n_in = 2 + len(packed)
    out2d = pl.pallas_call(
        decoder_kernel,
        out_shape=jax.ShapeDtypeStruct((b * l, e), queries.dtype),
        in_specs=[pl.BlockSpec(memory_space=pltpu.MemorySpace.VMEM)] * n_in,
        out_specs=pl.BlockSpec(memory_space=pltpu.MemorySpace.VMEM),
    )(q2d, f2d, *packed)
    return out2d.reshape(b, l, e)


# ------------------------------ pure-JAX reference ----------------------------------
def reference(queries, feats, params):
    (ln_att_w, ln_att_b,
     wq_s, wk_s, wv_s, wo_s, bo_s,
     ln_cq_w, ln_cq_b, ln_ckv_w, ln_ckv_b,
     wq_c, wk_c, wv_c, wo_c, bo_c,
     ln_mlp_w, ln_mlp_b,
     w1, b1, w2, b2) = params

    def ln(x, w, b):
        mu = jnp.mean(x, axis=-1, keepdims=True)
        var = jnp.mean((x - mu) ** 2, axis=-1, keepdims=True)
        return (x - mu) * jax.lax.rsqrt(var + EPS) * w + b

    def mha(xq, xkv, wq, wk, wv):
        q = xq @ wq.T
        k = xkv @ wk.T
        v = xkv @ wv.T
        bq, lq, _ = q.shape
        lk = k.shape[1]
        q = q.reshape(bq, lq, H, HD).transpose(0, 2, 1, 3)
        k = k.reshape(bq, lk, H, HD).transpose(0, 2, 1, 3)
        v = v.reshape(bq, lk, H, HD).transpose(0, 2, 1, 3)
        dots = jnp.einsum('bhid,bhjd->bhij', q, k) * HD ** (-0.5)
        attn = jax.nn.softmax(dots, axis=-1)
        o = jnp.einsum('bhij,bhjd->bhid', attn, v)
        return o.transpose(0, 2, 1, 3).reshape(bq, lq, H * HD)

    xn = ln(queries, ln_att_w, ln_att_b)
    x = mha(xn, xn, wq_s, wk_s, wv_s) @ wo_s.T + bo_s
    y = x + queries

    qn = ln(y, ln_cq_w, ln_cq_b)
    fn = ln(feats, ln_ckv_w, ln_ckv_b)
    z = mha(qn, fn, wq_c, wk_c, wv_c) @ wo_c.T + bo_c + y

    on = ln(z, ln_mlp_w, ln_mlp_b)
    h = jax.nn.gelu(on @ w1.T + b1, approximate=True)
    return h @ w2.T + b2 + z


# --------------------------------- main ---------------------------------------------
def _uniform(key, shape, fan_in):
    bound = 1.0 / (fan_in ** 0.5)
    return jax.random.uniform(key, shape, jnp.float32, -bound, bound)


if __name__ == "__main__":
    key = jax.random.PRNGKey(0)
    ks = jax.random.split(key, 20)

    queries = jax.random.normal(ks[0], (B, L, E), jnp.float32)
    feats = jax.random.normal(ks[1], (B, LK, KV), jnp.float32)

    # LayerNorm params (PyTorch default init: weight=1, bias=0), stored as (1, dim).
    ln_att_w = jnp.ones((1, E), jnp.float32);  ln_att_b = jnp.zeros((1, E), jnp.float32)
    ln_cq_w = jnp.ones((1, E), jnp.float32);   ln_cq_b = jnp.zeros((1, E), jnp.float32)
    ln_ckv_w = jnp.ones((1, KV), jnp.float32); ln_ckv_b = jnp.zeros((1, KV), jnp.float32)
    ln_mlp_w = jnp.ones((1, E), jnp.float32);  ln_mlp_b = jnp.zeros((1, E), jnp.float32)

    # Self-attention (q/k/v: Linear(E, INNER, bias=False); out_proj: Linear(INNER, E))
    wq_s = _uniform(ks[2], (INNER, E), E)
    wk_s = _uniform(ks[3], (INNER, E), E)
    wv_s = _uniform(ks[4], (INNER, E), E)
    wo_s = _uniform(ks[5], (E, INNER), INNER)
    bo_s = _uniform(ks[6], (1, E), INNER)

    # Cross-attention (q: Linear(E, INNER), k/v: Linear(KV, INNER), out_proj: Linear(INNER, E))
    wq_c = _uniform(ks[7], (INNER, E), E)
    wk_c = _uniform(ks[8], (INNER, KV), KV)
    wv_c = _uniform(ks[9], (INNER, KV), KV)
    wo_c = _uniform(ks[10], (E, INNER), INNER)
    bo_c = _uniform(ks[11], (1, E), INNER)

    # MLP: Linear(E, MLPS) -> GELU -> Linear(MLPS, E)
    w1 = _uniform(ks[12], (MLPS, E), E)
    b1 = _uniform(ks[13], (1, MLPS), E)
    w2 = _uniform(ks[14], (E, MLPS), MLPS)
    b2 = _uniform(ks[15], (1, E), MLPS)

    params = (ln_att_w, ln_att_b,
              wq_s, wk_s, wv_s, wo_s, bo_s,
              ln_cq_w, ln_cq_b, ln_ckv_w, ln_ckv_b,
              wq_c, wk_c, wv_c, wo_c, bo_c,
              ln_mlp_w, ln_mlp_b,
              w1, b1, w2, b2)

    out = transformer_decoder(queries, feats, params)
    out = jax.block_until_ready(out)

    ref = jax.block_until_ready(reference(queries, feats, params))
    assert out.shape == (B, L, E)
    assert jnp.allclose(out, ref, atol=1e-4, rtol=1e-4), \
        f"max abs err {jnp.max(jnp.abs(out - ref))}"

    print("KERNEL_OK")
</pallas_src>

<mosaic_0001>
module attributes {stable_mosaic.version = 11 : i64} {
  func.func @decoder_kernel(%arg0: memref<16x32xf32, #tpu.memory_space<vmem>>, %arg1: memref<32x48xf32, #tpu.memory_space<vmem>>, %arg2: memref<9x32xf32, #tpu.memory_space<vmem>>, %arg3: memref<2x48xf32, #tpu.memory_space<vmem>>, %arg4: memref<1x64xf32, #tpu.memory_space<vmem>>, %arg5: memref<8x32x48xf32, #tpu.memory_space<vmem>>, %arg6: memref<8x16x32xf32, #tpu.memory_space<vmem>>, %arg7: memref<8x32x16xf32, #tpu.memory_space<vmem>>, %arg8: memref<8x48x32xf32, #tpu.memory_space<vmem>>, %arg9: memref<8x16x32xf32, #tpu.memory_space<vmem>>, %arg10: memref<32x64xf32, #tpu.memory_space<vmem>>, %arg11: memref<64x32xf32, #tpu.memory_space<vmem>>, %arg12: memref<16x32xf32, #tpu.memory_space<vmem>>) attributes {dimension_semantics = [], scalar_prefetch = 0 : i64, scratch_operands = 0 : i64, tpu.core_type = #tpu.core_type<tc>} {
    %c0 = arith.constant 0 : index
    %c0_0 = arith.constant 0 : index
    %0 = vector.load %arg0[%c0, %c0_0] : memref<16x32xf32, #tpu.memory_space<vmem>>, vector<16x32xf32>
    %c0_1 = arith.constant 0 : index
    %c0_2 = arith.constant 0 : index
    %1 = vector.load %arg1[%c0_1, %c0_2] : memref<32x48xf32, #tpu.memory_space<vmem>>, vector<32x48xf32>
    %c0_3 = arith.constant 0 : index
    %c0_4 = arith.constant 0 : index
    %2 = vector.load %arg2[%c0_3, %c0_4] : memref<9x32xf32, #tpu.memory_space<vmem>>, vector<9x32xf32>
    %3 = vector.extract_strided_slice %2 {offsets = [0, 0], sizes = [1, 32], strides = [1, 1]} : vector<9x32xf32> to vector<1x32xf32>
    %4 = vector.extract_strided_slice %2 {offsets = [1, 0], sizes = [1, 32], strides = [1, 1]} : vector<9x32xf32> to vector<1x32xf32>
    %5 = vector.extract_strided_slice %2 {offsets = [2, 0], sizes = [1, 32], strides = [1, 1]} : vector<9x32xf32> to vector<1x32xf32>
    %6 = vector.extract_strided_slice %2 {offsets = [3, 0], sizes = [1, 32], strides = [1, 1]} : vector<9x32xf32> to vector<1x32xf32>
    %7 = vector.extract_strided_slice %2 {offsets = [4, 0], sizes = [1, 32], strides = [1, 1]} : vector<9x32xf32> to vector<1x32xf32>
    %8 = vector.extract_strided_slice %2 {offsets = [5, 0], sizes = [1, 32], strides = [1, 1]} : vector<9x32xf32> to vector<1x32xf32>
    %9 = vector.extract_strided_slice %2 {offsets = [6, 0], sizes = [1, 32], strides = [1, 1]} : vector<9x32xf32> to vector<1x32xf32>
    %10 = vector.extract_strided_slice %2 {offsets = [7, 0], sizes = [1, 32], strides = [1, 1]} : vector<9x32xf32> to vector<1x32xf32>
    %11 = vector.extract_strided_slice %2 {offsets = [8, 0], sizes = [1, 32], strides = [1, 1]} : vector<9x32xf32> to vector<1x32xf32>
    %c0_5 = arith.constant 0 : index
    %c0_6 = arith.constant 0 : index
    %12 = vector.load %arg3[%c0_5, %c0_6] : memref<2x48xf32, #tpu.memory_space<vmem>>, vector<2x48xf32>
    %cst = arith.constant dense<0.000000e+00> : vector<16xf32>
    %13 = vector.multi_reduction <add>, %0, %cst [1] : vector<16x32xf32> to vector<16xf32>
    %14 = vector.shape_cast %13 : vector<16xf32> to vector<16x1xf32>
    %cst_7 = arith.constant 3.200000e+01 : f32
    %15 = vector.broadcast %cst_7 : f32 to vector<16x1xf32>
    %16 = arith.divf %14, %15 : vector<16x1xf32>
    %17 = vector.broadcast %16 : vector<16x1xf32> to vector<16x32xf32>
    %18 = arith.subf %0, %17 : vector<16x32xf32>
    %19 = arith.mulf %18, %18 : vector<16x32xf32>
    %cst_8 = arith.constant dense<0.000000e+00> : vector<16xf32>
    %20 = vector.multi_reduction <add>, %19, %cst_8 [1] : vector<16x32xf32> to vector<16xf32>
    %21 = vector.shape_cast %20 : vector<16xf32> to vector<16x1xf32>
    %cst_9 = arith.constant 3.200000e+01 : f32
    %22 = vector.broadcast %cst_9 : f32 to vector<16x1xf32>
    %23 = arith.divf %21, %22 : vector<16x1xf32>
    %24 = vector.broadcast %16 : vector<16x1xf32> to vector<16x32xf32>
    %25 = arith.subf %0, %24 : vector<16x32xf32>
    %cst_10 = arith.constant 9.99999997E-7 : f32
    %26 = vector.broadcast %cst_10 : f32 to vector<16x1xf32>
    %27 = arith.addf %23, %26 : vector<16x1xf32>
    %28 = math.rsqrt %27 : vector<16x1xf32>
    %29 = vector.broadcast %28 : vector<16x1xf32> to vector<16x32xf32>
    %30 = arith.mulf %25, %29 : vector<16x32xf32>
    %31 = vector.broadcast %3 : vector<1x32xf32> to vector<16x32xf32>
    %32 = arith.mulf %30, %31 : vector<16x32xf32>
    %33 = vector.broadcast %4 : vector<1x32xf32> to vector<16x32xf32>
    %34 = arith.addf %32, %33 : vector<16x32xf32>
    %35 = vector.shape_cast %34 : vector<16x32xf32> to vector<2x1x8x32xf32>
    %36 = vector.shape_cast %35 : vector<2x1x8x32xf32> to vector<2x1x8x32xf32>
    %37 = vector.broadcast %36 : vector<2x1x8x32xf32> to vector<2x4x8x32xf32>
    %38 = vector.shape_cast %37 : vector<2x4x8x32xf32> to vector<8x8x32xf32>
    %c0_11 = arith.constant 0 : index
    %c0_12 = arith.constant 0 : index
    %c0_13 = arith.constant 0 : index
    %39 = vector.load %arg5[%c0_11, %c0_12, %c0_13] : memref<8x32x48xf32, #tpu.memory_space<vmem>>, vector<8x32x48xf32>
    "tpu.trace_start"() <{level = 10 : i32, message = "bte,bef->btf"}> : () -> ()
    %cst_14 = arith.constant dense<0.000000e+00> : vector<8x8x48xf32>
    %40 = tpu.matmul %38, %39, %cst_14 {dimension_numbers = #tpu.dot_dimension_numbers<[2], [1], [1], [2], [0, 0, 0, 1, 1, 2], [0], [0]>} : vector<8x8x32xf32>, vector<8x32x48xf32>, vector<8x8x48xf32> -> vector<8x8x48xf32>
    "tpu.trace_stop"() : () -> ()
    %41 = vector.extract_strided_slice %40 {offsets = [0, 0, 0], sizes = [8, 8, 16], strides = [1, 1, 1]} : vector<8x8x48xf32> to vector<8x8x16xf32>
    %42 = vector.extract_strided_slice %40 {offsets = [0, 0, 16], sizes = [8, 8, 16], strides = [1, 1, 1]} : vector<8x8x48xf32> to vector<8x8x16xf32>
    %43 = vector.extract_strided_slice %40 {offsets = [0, 0, 32], sizes = [8, 8, 16], strides = [1, 1, 1]} : vector<8x8x48xf32> to vector<8x8x16xf32>
    %c0_15 = arith.constant 0 : index
    %c0_16 = arith.constant 0 : index
    %c0_17 = arith.constant 0 : index
    %44 = vector.load %arg6[%c0_15, %c0_16, %c0_17] : memref<8x16x32xf32, #tpu.memory_space<vmem>>, vector<8x16x32xf32>
    "tpu.trace_start"() <{level = 10 : i32, message = "bqd,bkd->bqk"}> : () -> ()
    %cst_18 = arith.constant dense<0.000000e+00> : vector<8x8x8xf32>
    %45 = tpu.matmul %41, %42, %cst_18 {dimension_numbers = #tpu.dot_dimension_numbers<[2], [2], [1], [1], [0, 0, 0, 1, 1, 1], [0], [0]>} : vector<8x8x16xf32>, vector<8x8x16xf32>, vector<8x8x8xf32> -> vector<8x8x8xf32>
    "tpu.trace_stop"() : () -> ()
    %cst_19 = arith.constant dense<0xFF800000> : vector<8x8xf32>
    %46 = vector.multi_reduction <maximumf>, %45, %cst_19 [2] : vector<8x8x8xf32> to vector<8x8xf32>
    %47 = vector.shape_cast %46 : vector<8x8xf32> to vector<8x8x1xf32>
    %48 = vector.broadcast %47 : vector<8x8x1xf32> to vector<8x8x8xf32>
    %49 = arith.subf %45, %48 : vector<8x8x8xf32>
    %50 = math.exp %49 : vector<8x8x8xf32>
    %cst_20 = arith.constant dense<0.000000e+00> : vector<8x8xf32>
    %51 = vector.multi_reduction <add>, %50, %cst_20 [2] : vector<8x8x8xf32> to vector<8x8xf32>
    %52 = vector.shape_cast %51 : vector<8x8xf32> to vector<8x8x1xf32>
    %53 = tpu.reciprocal %52 : vector<8x8x1xf32> -> vector<8x8x1xf32>
    %54 = vector.broadcast %53 : vector<8x8x1xf32> to vector<8x8x8xf32>
    %55 = arith.mulf %50, %54 : vector<8x8x8xf32>
    "tpu.trace_start"() <{level = 10 : i32, message = "bqk,bkd->bqd"}> : () -> ()
    %cst_21 = arith.constant dense<0.000000e+00> : vector<8x8x16xf32>
    %56 = tpu.matmul %55, %43, %cst_21 {dimension_numbers = #tpu.dot_dimension_numbers<[2], [1], [1], [2], [0, 0, 0, 1, 1, 2], [0], [0]>} : vector<8x8x8xf32>, vector<8x8x16xf32>, vector<8x8x16xf32> -> vector<8x8x16xf32>
    "tpu.trace_stop"() : () -> ()
    "tpu.trace_start"() <{level = 10 : i32, message = "bqd,bde->bqe"}> : () -> ()
    %cst_22 = arith.constant dense<0.000000e+00> : vector<8x8x32xf32>
    %57 = tpu.matmul %56, %44, %cst_22 {dimension_numbers = #tpu.dot_dimension_numbers<[2], [1], [1], [2], [0, 0, 0, 1, 1, 2], [0], [0]>} : vector<8x8x16xf32>, vector<8x16x32xf32>, vector<8x8x32xf32> -> vector<8x8x32xf32>
    "tpu.trace_stop"() : () -> ()
    %58 = vector.shape_cast %57 : vector<8x8x32xf32> to vector<2x4x8x32xf32>
    %59 = vector.extract_strided_slice %58 {offsets = [0, 0, 0, 0], sizes = [2, 1, 8, 32], strides = [1, 1, 1, 1]} : vector<2x4x8x32xf32> to vector<2x1x8x32xf32>
    %60 = vector.shape_cast %59 : vector<2x1x8x32xf32> to vector<2x8x32xf32>
    %61 = vector.extract_strided_slice %58 {offsets = [0, 1, 0, 0], sizes = [2, 1, 8, 32], strides = [1, 1, 1, 1]} : vector<2x4x8x32xf32> to vector<2x1x8x32xf32>
    %62 = vector.shape_cast %61 : vector<2x1x8x32xf32> to vector<2x8x32xf32>
    %63 = arith.addf %60, %62 : vector<2x8x32xf32>
    %64 = vector.extract_strided_slice %58 {offsets = [0, 2, 0, 0], sizes = [2, 1, 8, 32], strides = [1, 1, 1, 1]} : vector<2x4x8x32xf32> to vector<2x1x8x32xf32>
    %65 = vector.shape_cast %64 : vector<2x1x8x32xf32> to vector<2x8x32xf32>
    %66 = arith.addf %63, %65 : vector<2x8x32xf32>
    %67 = vector.extract_strided_slice %58 {offsets = [0, 3, 0, 0], sizes = [2, 1, 8, 32], strides = [1, 1, 1, 1]} : vector<2x4x8x32xf32> to vector<2x1x8x32xf32>
    %68 = vector.shape_cast %67 : vector<2x1x8x32xf32> to vector<2x8x32xf32>
    %69 = arith.addf %66, %68 : vector<2x8x32xf32>
    %70 = vector.shape_cast %69 : vector<2x8x32xf32> to vector<16x32xf32>
    %71 = vector.broadcast %9 : vector<1x32xf32> to vector<16x32xf32>
    %72 = arith.addf %70, %71 : vector<16x32xf32>
    %73 = arith.addf %72, %0 : vector<16x32xf32>
    %cst_23 = arith.constant dense<0.000000e+00> : vector<16xf32>
    %74 = vector.multi_reduction <add>, %73, %cst_23 [1] : vector<16x32xf32> to vector<16xf32>
    %75 = vector.shape_cast %74 : vector<16xf32> to vector<16x1xf32>
    %cst_24 = arith.constant 3.200000e+01 : f32
    %76 = vector.broadcast %cst_24 : f32 to vector<16x1xf32>
    %77 = arith.divf %75, %76 : vector<16x1xf32>
    %78 = vector.broadcast %77 : vector<16x1xf32> to vector<16x32xf32>
    %79 = arith.subf %73, %78 : vector<16x32xf32>
    %80 = arith.mulf %79, %79 : vector<16x32xf32>
    %cst_25 = arith.constant dense<0.000000e+00> : vector<16xf32>
    %81 = vector.multi_reduction <add>, %80, %cst_25 [1] : vector<16x32xf32> to vector<16xf32>
    %82 = vector.shape_cast %81 : vector<16xf32> to vector<16x1xf32>
    %cst_26 = arith.constant 3.200000e+01 : f32
    %83 = vector.broadcast %cst_26 : f32 to vector<16x1xf32>
    %84 = arith.divf %82, %83 : vector<16x1xf32>
    %85 = vector.broadcast %77 : vector<16x1xf32> to vector<16x32xf32>
    %86 = arith.subf %73, %85 : vector<16x32xf32>
    %cst_27 = arith.constant 9.99999997E-7 : f32
    %87 = vector.broadcast %cst_27 : f32 to vector<16x1xf32>
    %88 = arith.addf %84, %87 : vector<16x1xf32>
    %89 = math.rsqrt %88 : vector<16x1xf32>
    %90 = vector.broadcast %89 : vector<16x1xf32> to vector<16x32xf32>
    %91 = arith.mulf %86, %90 : vector<16x32xf32>
    %92 = vector.broadcast %5 : vector<1x32xf32> to vector<16x32xf32>
    %93 = arith.mulf %91, %92 : vector<16x32xf32>
    %94 = vector.broadcast %6 : vector<1x32xf32> to vector<16x32xf32>
    %95 = arith.addf %93, %94 : vector<16x32xf32>
    %96 = vector.extract_strided_slice %12 {offsets = [0, 0], sizes = [1, 48], strides = [1, 1]} : vector<2x48xf32> to vector<1x48xf32>
    %97 = vector.extract_strided_slice %12 {offsets = [1, 0], sizes = [1, 48], strides = [1, 1]} : vector<2x48xf32> to vector<1x48xf32>
    %cst_28 = arith.constant dense<0.000000e+00> : vector<32xf32>
    %98 = vector.multi_reduction <add>, %1, %cst_28 [1] : vector<32x48xf32> to vector<32xf32>
    %99 = vector.shape_cast %98 : vector<32xf32> to vector<32x1xf32>
    %cst_29 = arith.constant 4.800000e+01 : f32
    %100 = vector.broadcast %cst_29 : f32 to vector<32x1xf32>
    %101 = arith.divf %99, %100 : vector<32x1xf32>
    %102 = vector.broadcast %101 : vector<32x1xf32> to vector<32x48xf32>
    %103 = arith.subf %1, %102 : vector<32x48xf32>
    %104 = arith.mulf %103, %103 : vector<32x48xf32>
    %cst_30 = arith.constant dense<0.000000e+00> : vector<32xf32>
    %105 = vector.multi_reduction <add>, %104, %cst_30 [1] : vector<32x48xf32> to vector<32xf32>
    %106 = vector.shape_cast %105 : vector<32xf32> to vector<32x1xf32>
    %cst_31 = arith.constant 4.800000e+01 : f32
    %107 = vector.broadcast %cst_31 : f32 to vector<32x1xf32>
    %108 = arith.divf %106, %107 : vector<32x1xf32>
    %109 = vector.broadcast %101 : vector<32x1xf32> to vector<32x48xf32>
    %110 = arith.subf %1, %109 : vector<32x48xf32>
    %cst_32 = arith.constant 9.99999997E-7 : f32
    %111 = vector.broadcast %cst_32 : f32 to vector<32x1xf32>
    %112 = arith.addf %108, %111 : vector<32x1xf32>
    %113 = math.rsqrt %112 : vector<32x1xf32>
    %114 = vector.broadcast %113 : vector<32x1xf32> to vector<32x48xf32>
    %115 = arith.mulf %110, %114 : vector<32x48xf32>
    %116 = vector.broadcast %96 : vector<1x48xf32> to vector<32x48xf32>
    %117 = arith.mulf %115, %116 : vector<32x48xf32>
    %118 = vector.broadcast %97 : vector<1x48xf32> to vector<32x48xf32>
    %119 = arith.addf %117, %118 : vector<32x48xf32>
    %120 = vector.shape_cast %95 : vector<16x32xf32> to vector<2x1x8x32xf32>
    %121 = vector.shape_cast %120 : vector<2x1x8x32xf32> to vector<2x1x8x32xf32>
    %122 = vector.broadcast %121 : vector<2x1x8x32xf32> to vector<2x4x8x32xf32>
    %123 = vector.shape_cast %122 : vector<2x4x8x32xf32> to vector<8x8x32xf32>
    %c0_33 = arith.constant 0 : index
    %c0_34 = arith.constant 0 : index
    %c0_35 = arith.constant 0 : index
    %124 = vector.load %arg7[%c0_33, %c0_34, %c0_35] : memref<8x32x16xf32, #tpu.memory_space<vmem>>, vector<8x32x16xf32>
    "tpu.trace_start"() <{level = 10 : i32, message = "bte,bed->btd"}> : () -> ()
    %cst_36 = arith.constant dense<0.000000e+00> : vector<8x8x16xf32>
    %125 = tpu.matmul %123, %124, %cst_36 {dimension_numbers = #tpu.dot_dimension_numbers<[2], [1], [1], [2], [0, 0, 0, 1, 1, 2], [0], [0]>} : vector<8x8x32xf32>, vector<8x32x16xf32>, vector<8x8x16xf32> -> vector<8x8x16xf32>
    "tpu.trace_stop"() : () -> ()
    %126 = vector.shape_cast %119 : vector<32x48xf32> to vector<2x1x16x48xf32>
    %127 = vector.shape_cast %126 : vector<2x1x16x48xf32> to vector<2x1x16x48xf32>
    %128 = vector.broadcast %127 : vector<2x1x16x48xf32> to vector<2x4x16x48xf32>
    %129 = vector.shape_cast %128 : vector<2x4x16x48xf32> to vector<8x16x48xf32>
    %c0_37 = arith.constant 0 : index
    %c0_38 = arith.constant 0 : index
    %c0_39 = arith.constant 0 : index
    %130 = vector.load %arg8[%c0_37, %c0_38, %c0_39] : memref<8x48x32xf32, #tpu.memory_space<vmem>>, vector<8x48x32xf32>
    "tpu.trace_start"() <{level = 10 : i32, message = "bte,bef->btf"}> : () -> ()
    %cst_40 = arith.constant dense<0.000000e+00> : vector<8x16x32xf32>
    %131 = tpu.matmul %129, %130, %cst_40 {dimension_numbers = #tpu.dot_dimension_numbers<[2], [1], [1], [2], [0, 0, 0, 1, 1, 2], [0], [0]>} : vector<8x16x48xf32>, vector<8x48x32xf32>, vector<8x16x32xf32> -> vector<8x16x32xf32>
    "tpu.trace_stop"() : () -> ()
    %132 = vector.extract_strided_slice %131 {offsets = [0, 0, 0], sizes = [8, 16, 16], strides = [1, 1, 1]} : vector<8x16x32xf32> to vector<8x16x16xf32>
    %133 = vector.extract_strided_slice %131 {offsets = [0, 0, 16], sizes = [8, 16, 16], strides = [1, 1, 1]} : vector<8x16x32xf32> to vector<8x16x16xf32>
    %c0_41 = arith.constant 0 : index
    %c0_42 = arith.constant 0 : index
    %c0_43 = arith.constant 0 : index
    %134 = vector.load %arg9[%c0_41, %c0_42, %c0_43] : memref<8x16x32xf32, #tpu.memory_space<vmem>>, vector<8x16x32xf32>
    "tpu.trace_start"() <{level = 10 : i32, message = "bqd,bkd->bqk"}> : () -> ()
    %cst_44 = arith.constant dense<0.000000e+00> : vector<8x8x16xf32>
    %135 = tpu.matmul %125, %132, %cst_44 {dimension_numbers = #tpu.dot_dimension_numbers<[2], [2], [1], [1], [0, 0, 0, 1, 1, 1], [0], [0]>} : vector<8x8x16xf32>, vector<8x16x16xf32>, vector<8x8x16xf32> -> vector<8x8x16xf32>
    "tpu.trace_stop"() : () -> ()
    %cst_45 = arith.constant dense<0xFF800000> : vector<8x8xf32>
    %136 = vector.multi_reduction <maximumf>, %135, %cst_45 [2] : vector<8x8x16xf32> to vector<8x8xf32>
    %137 = vector.shape_cast %136 : vector<8x8xf32> to vector<8x8x1xf32>
    %138 = vector.broadcast %137 : vector<8x8x1xf32> to vector<8x8x16xf32>
    %139 = arith.subf %135, %138 : vector<8x8x16xf32>
    %140 = math.exp %139 : vector<8x8x16xf32>
    %cst_46 = arith.constant dense<0.000000e+00> : vector<8x8xf32>
    %141 = vector.multi_reduction <add>, %140, %cst_46 [2] : vector<8x8x16xf32> to vector<8x8xf32>
    %142 = vector.shape_cast %141 : vector<8x8xf32> to vector<8x8x1xf32>
    %143 = tpu.reciprocal %142 : vector<8x8x1xf32> -> vector<8x8x1xf32>
    %144 = vector.broadcast %143 : vector<8x8x1xf32> to vector<8x8x16xf32>
    %145 = arith.mulf %140, %144 : vector<8x8x16xf32>
    "tpu.trace_start"() <{level = 10 : i32, message = "bqk,bkd->bqd"}> : () -> ()
    %cst_47 = arith.constant dense<0.000000e+00> : vector<8x8x16xf32>
    %146 = tpu.matmul %145, %133, %cst_47 {dimension_numbers = #tpu.dot_dimension_numbers<[2], [1], [1], [2], [0, 0, 0, 1, 1, 2], [0], [0]>} : vector<8x8x16xf32>, vector<8x16x16xf32>, vector<8x8x16xf32> -> vector<8x8x16xf32>
    "tpu.trace_stop"() : () -> ()
    "tpu.trace_start"() <{level = 10 : i32, message = "bqd,bde->bqe"}> : () -> ()
    %cst_48 = arith.constant dense<0.000000e+00> : vector<8x8x32xf32>
    %147 = tpu.matmul %146, %134, %cst_48 {dimension_numbers = #tpu.dot_dimension_numbers<[2], [1], [1], [2], [0, 0, 0, 1, 1, 2], [0], [0]>} : vector<8x8x16xf32>, vector<8x16x32xf32>, vector<8x8x32xf32> -> vector<8x8x32xf32>
    "tpu.trace_stop"() : () -> ()
    %148 = vector.shape_cast %147 : vector<8x8x32xf32> to vector<2x4x8x32xf32>
    %149 = vector.extract_strided_slice %148 {offsets = [0, 0, 0, 0], sizes = [2, 1, 8, 32], strides = [1, 1, 1, 1]} : vector<2x4x8x32xf32> to vector<2x1x8x32xf32>
    %150 = vector.shape_cast %149 : vector<2x1x8x32xf32> to vector<2x8x32xf32>
    %151 = vector.extract_strided_slice %148 {offsets = [0, 1, 0, 0], sizes = [2, 1, 8, 32], strides = [1, 1, 1, 1]} : vector<2x4x8x32xf32> to vector<2x1x8x32xf32>
    %152 = vector.shape_cast %151 : vector<2x1x8x32xf32> to vector<2x8x32xf32>
    %153 = arith.addf %150, %152 : vector<2x8x32xf32>
    %154 = vector.extract_strided_slice %148 {offsets = [0, 2, 0, 0], sizes = [2, 1, 8, 32], strides = [1, 1, 1, 1]} : vector<2x4x8x32xf32> to vector<2x1x8x32xf32>
    %155 = vector.shape_cast %154 : vector<2x1x8x32xf32> to vector<2x8x32xf32>
    %156 = arith.addf %153, %155 : vector<2x8x32xf32>
    %157 = vector.extract_strided_slice %148 {offsets = [0, 3, 0, 0], sizes = [2, 1, 8, 32], strides = [1, 1, 1, 1]} : vector<2x4x8x32xf32> to vector<2x1x8x32xf32>
    %158 = vector.shape_cast %157 : vector<2x1x8x32xf32> to vector<2x8x32xf32>
    %159 = arith.addf %156, %158 : vector<2x8x32xf32>
    %160 = vector.shape_cast %159 : vector<2x8x32xf32> to vector<16x32xf32>
    %161 = vector.broadcast %10 : vector<1x32xf32> to vector<16x32xf32>
    %162 = arith.addf %160, %161 : vector<16x32xf32>
    %163 = arith.addf %162, %73 : vector<16x32xf32>
    %cst_49 = arith.constant dense<0.000000e+00> : vector<16xf32>
    %164 = vector.multi_reduction <add>, %163, %cst_49 [1] : vector<16x32xf32> to vector<16xf32>
    %165 = vector.shape_cast %164 : vector<16xf32> to vector<16x1xf32>
    %cst_50 = arith.constant 3.200000e+01 : f32
    %166 = vector.broadcast %cst_50 : f32 to vector<16x1xf32>
    %167 = arith.divf %165, %166 : vector<16x1xf32>
    %168 = vector.broadcast %167 : vector<16x1xf32> to vector<16x32xf32>
    %169 = arith.subf %163, %168 : vector<16x32xf32>
    %170 = arith.mulf %169, %169 : vector<16x32xf32>
    %cst_51 = arith.constant dense<0.000000e+00> : vector<16xf32>
    %171 = vector.multi_reduction <add>, %170, %cst_51 [1] : vector<16x32xf32> to vector<16xf32>
    %172 = vector.shape_cast %171 : vector<16xf32> to vector<16x1xf32>
    %cst_52 = arith.constant 3.200000e+01 : f32
    %173 = vector.broadcast %cst_52 : f32 to vector<16x1xf32>
    %174 = arith.divf %172, %173 : vector<16x1xf32>
    %175 = vector.broadcast %167 : vector<16x1xf32> to vector<16x32xf32>
    %176 = arith.subf %163, %175 : vector<16x32xf32>
    %cst_53 = arith.constant 9.99999997E-7 : f32
    %177 = vector.broadcast %cst_53 : f32 to vector<16x1xf32>
    %178 = arith.addf %174, %177 : vector<16x1xf32>
    %179 = math.rsqrt %178 : vector<16x1xf32>
    %180 = vector.broadcast %179 : vector<16x1xf32> to vector<16x32xf32>
    %181 = arith.mulf %176, %180 : vector<16x32xf32>
    %182 = vector.broadcast %7 : vector<1x32xf32> to vector<16x32xf32>
    %183 = arith.mulf %181, %182 : vector<16x32xf32>
    %184 = vector.broadcast %8 : vector<1x32xf32> to vector<16x32xf32>
    %185 = arith.addf %183, %184 : vector<16x32xf32>
    %c0_54 = arith.constant 0 : index
    %c0_55 = arith.constant 0 : index
    %186 = vector.load %arg10[%c0_54, %c0_55] : memref<32x64xf32, #tpu.memory_space<vmem>>, vector<32x64xf32>
    %cst_56 = arith.constant dense<0.000000e+00> : vector<16x64xf32>
    %187 = tpu.matmul %185, %186, %cst_56 {dimension_numbers = #tpu.dot_dimension_numbers<[1], [0], [0], [1], [0, 0, 1, 1], [], []>} : vector<16x32xf32>, vector<32x64xf32>, vector<16x64xf32> -> vector<16x64xf32>
    %c0_57 = arith.constant 0 : index
    %c0_58 = arith.constant 0 : index
    %188 = vector.load %arg4[%c0_57, %c0_58] : memref<1x64xf32, #tpu.memory_space<vmem>>, vector<1x64xf32>
    %189 = vector.broadcast %188 : vector<1x64xf32> to vector<16x64xf32>
    %190 = arith.addf %187, %189 : vector<16x64xf32>
    %191 = arith.mulf %190, %190 : vector<16x64xf32>
    %192 = arith.mulf %190, %191 : vector<16x64xf32>
    %cst_59 = arith.constant 4.471500e-02 : f32
    %193 = vector.broadcast %cst_59 : f32 to vector<16x64xf32>
    %194 = arith.mulf %193, %192 : vector<16x64xf32>
    %195 = arith.addf %190, %194 : vector<16x64xf32>
    %cst_60 = arith.constant 0.797884583 : f32
    %196 = vector.broadcast %cst_60 : f32 to vector<16x64xf32>
    %197 = arith.mulf %196, %195 : vector<16x64xf32>
    %198 = math.tanh %197 : vector<16x64xf32>
    %cst_61 = arith.constant 1.000000e+00 : f32
    %199 = vector.broadcast %cst_61 : f32 to vector<16x64xf32>
    %200 = arith.addf %199, %198 : vector<16x64xf32>
    %cst_62 = arith.constant 5.000000e-01 : f32
    %201 = vector.broadcast %cst_62 : f32 to vector<16x64xf32>
    %202 = arith.mulf %201, %200 : vector<16x64xf32>
    %203 = arith.mulf %190, %202 : vector<16x64xf32>
    %c0_63 = arith.constant 0 : index
    %c0_64 = arith.constant 0 : index
    %204 = vector.load %arg11[%c0_63, %c0_64] : memref<64x32xf32, #tpu.memory_space<vmem>>, vector<64x32xf32>
    %cst_65 = arith.constant dense<0.000000e+00> : vector<16x32xf32>
    %205 = tpu.matmul %203, %204, %cst_65 {dimension_numbers = #tpu.dot_dimension_numbers<[1], [0], [0], [1], [0, 0, 1, 1], [], []>} : vector<16x64xf32>, vector<64x32xf32>, vector<16x32xf32> -> vector<16x32xf32>
    %206 = vector.broadcast %11 : vector<1x32xf32> to vector<16x32xf32>
    %207 = arith.addf %205, %206 : vector<16x32xf32>
    %208 = arith.addf %207, %163 : vector<16x32xf32>
    %c0_66 = arith.constant 0 : index
    %c0_67 = arith.constant 0 : index
    %209 = vector.load %arg12[%c0_66, %c0_67] : memref<16x32xf32, #tpu.memory_space<vmem>>, vector<16x32xf32>
    tpu.vector_store %arg12[%c0_66, %c0_67], %208 {strides = array<i32>} : memref<16x32xf32, #tpu.memory_space<vmem>>, vector<16x32xf32>,
    return
  }
}

</mosaic_0001>

<bundles_post_ra>
// kernel: transformer_decoder.1
= control target key start
LH: loop header
LB: loop body
LE: loop exit
PB: predicated region body
PF: predicated region fallthrough
CT: control target
= control target key end

     0   :  { %vm51_vm0 = vcmask 261120   ;;  %s8702_s0 = inlined_call_operand.vmem [shape: f32[16,32], index: 0, kind: input, shape index: {}]   ;;  %s8703_s1 = inlined_call_operand.vmem [shape: f32[32,48], index: 1, kind: input, shape index: {}]   ;;  %s8704_s2 = inlined_call_operand.vmem [shape: f32[9,32], index: 2, kind: input, shape index: {}]   ;;  %s8705_s3 = inlined_call_operand.vmem [shape: f32[2,48], index: 3, kind: input, shape index: {}]   ;;  %s8706_s4 = inlined_call_operand.vmem [shape: f32[1,64], index: 4, kind: input, shape index: {}]   ;;  %s8707_s5 = inlined_call_operand.vmem [shape: f32[8,32,48], index: 5, kind: input, shape index: {}]   ;;  %s8708_s6 = inlined_call_operand.vmem [shape: f32[8,16,32], index: 6, kind: input, shape index: {}]   ;;  %s8709_s7 = inlined_call_operand.vmem [shape: f32[8,32,16], index: 7, kind: input, shape index: {}]   ;;  %s8710_s8 = inlined_call_operand.vmem [shape: f32[8,48,32], index: 8, kind: input, shape index: {}]   ;;  %s8711_s9 = inlined_call_operand.vmem [shape: f32[8,16,32], index: 9, kind: input, shape index: {}]   ;;  %s8712_s10 = inlined_call_operand.vmem [shape: f32[32,64], index: 10, kind: input, shape index: {}]   ;;  %s8713_s11 = inlined_call_operand.vmem [shape: f32[64,32], index: 11, kind: input, shape index: {}]   ;;  %s8714_s12 = inlined_call_operand.hbm [shape: f32[16,32], index: 12, kind: output, shape index: {}]  }
   0x1   :  { %v7434_v0 = vld [vmem:[%s8702_s0] sm:$0xff]  ;;  %v43_v1 = vld [vmem:[%s8702_s0 + $0x8] sm:$0xff] }
   0x2   :  { %17 = vsyncpa [#allocation3], 0  ;;  %v52_v2 = vsel %vm51_vm0, %v7434_v0, 0.0  ;;  %v55_v3 = vsel %vm51_vm0, %v43_v1, 0.0  ;;  %v94_v14 = vld [vmem:[%s8707_s5 + $0x18] sm:$0xff]  ;;  %v7359_v16 = vmov 0.0   ;;  %v79_v26 = vlaneseq }
   0x3   :  { %53 = vadd.xlane.f32.xlu0 %v52_v2  ;;  %v98_v15 = vld [vmem:[%s8707_s5 + $0x38] sm:$0xff]  ;;  %6609 = vmatprep.subr.mxu0 %v7359_v16  ;;  %v93_v17 = vld [vmem:[%s8707_s5 + $0x10] sm:$0xff]  ;;  %v92_v19 = vld [vmem:[%s8707_s5 + $0x8] sm:$0xff]  ;;  %vm7360_vm1 = vmmov 0   ;;  %vm708_vm2 = vcmask 130048   ;;  %vm1322_vm3 = vcmask 64512  }
   0x4   :  { %6620 = vmatprep.subr.mxu1 %v7359_v16  ;;  %v97_v18 = vld [vmem:[%s8707_s5 + $0x30] sm:$0xff]  ;;  %6610 = vmatpush3.msra.mxu0 %v94_v14  ;;  %v96_v20 = vld [vmem:[%s8707_s5 + $0x28] sm:$0xff]  ;;  %v91_v21 = vld [vmem:[%s8707_s5] sm:$0xff]  ;;  %v7487_v28 = vshrl.u32 %v79_v26, 7  ;;  %s7362_s19 = smov 96   ;;  %vm2655_vm4 = vcmask 392192  }
   0x5   :  { %6621 = vmatpush3.msra.mxu1 %v98_v15  ;;  %6611 = vmatprep.subr.mxu0 %v7359_v16  ;;  %v95_v22 = vld [vmem:[%s8707_s5 + $0x20] sm:$0xff]  ;;  %v102_v40 = vld [vmem:[%s8707_s5 + $0x58] sm:$0xff]  ;;  %v101_v42 = vld [vmem:[%s8707_s5 + $0x50] sm:$0xff]  ;;  %vm6109_vm5 = vcmask 523264   ;;  %s7363_s15 = smov [#allocation2]  }
   0x6   :  { %6622 = vmatprep.subr.mxu1 %v7359_v16  ;;  %6612 = vmatpush3.msra.mxu0 %v93_v17  ;;  %v81_v30 = vsub.s32 0, %v7487_v28  ;;  %v7493_v32 = vld [vmem:[%s8704_s2] sm:$0xff]  ;;  %v87_v33 = vsub.s32 1, %v7487_v28  ;;  %v106_v41 = vld [vmem:[%s8707_s5 + $0x78] sm:$0xff]  ;;  %v105_v43 = vld [vmem:[%s8707_s5 + $0x70] sm:$0xff] }
   0x7   :  { %56 = vadd.xlane.f32.xlu0 %v55_v3  ;;  %6623 = vmatpush3.msra.mxu1 %v97_v18  ;;  %v100_v44 = vld [vmem:[%s8707_s5 + $0x48] sm:$0xff]  ;;  %v99_v46 = vld [vmem:[%s8707_s5 + $0x40] sm:$0xff]  ;;  %v110_v49 = vld [vmem:[%s8707_s5 + $0x98] sm:$0xff] }
   0x8   :  { %6613 = vmatprep.subr.mxu0 %v7359_v16  ;;  %6624 = vmatprep.subr.mxu1 %v7359_v16  ;;  %v82_v34 = vrot.slane %v7493_v32, %v81_v30  ;;  %v88_v37 = vrot.slane %v7493_v32, %v87_v33  ;;  %v104_v45 = vld [vmem:[%s8707_s5 + $0x68] sm:$0xff]  ;;  %v103_v47 = vld [vmem:[%s8707_s5 + $0x60] sm:$0xff]  ;;  %v114_v50 = vld [vmem:[%s8707_s5 + $0xb8] sm:$0xff] }
   0x9   :  { %6614 = vmatpush3.msra.mxu0 %v92_v19  ;;  %6625 = vmatpush3.msra.mxu1 %v96_v20  ;;  %v109_v52 = vld [vmem:[%s8707_s5 + $0x90] sm:$0xff]  ;;  %v108_v54 = vld [vmem:[%s8707_s5 + $0x88] sm:$0xff]  ;;  %v107_v57 = vld [vmem:[%s8707_s5 + $0x80] sm:$0xff] }
   0xa   :  { %6615 = vmatprep.subr.mxu0 %v7359_v16  ;;  %6626 = vmatprep.subr.mxu1 %v7359_v16  ;;  %v113_v53 = vld [vmem:[%s8707_s5 + $0xb0] sm:$0xff]  ;;  %v112_v55 = vld [vmem:[%s8707_s5 + $0xa8] sm:$0xff]  ;;  %v111_v58 = vld [vmem:[%s8707_s5 + $0xa0] sm:$0xff] }
   0xb   :  { %6616 = vmatpush3.msra.mxu0 %v91_v21  ;;  %6627 = vmatpush3.msra.mxu1 %v95_v22  ;;  %v118_v60 = vld [vmem:[%s8707_s5 + $0xd8] sm:$0xff]  ;;  %v117_v62 = vld [vmem:[%s8707_s5 + $0xd0] sm:$0xff]  ;;  %v120_v2 = vld [vmem:[%s8707_s5 + $0xe8] sm:$0xff] }
   0xc   :  { %6617 = vmatprep.mubr.msk.f32.mxu0 %vm7360_vm1, %v7359_v16  ;;  %6628 = vmatprep.mubr.msk.f32.mxu1 %vm7360_vm1, %v7359_v16  ;;  %v122_v61 = vld [vmem:[%s8707_s5 + $0xf8] sm:$0xff]  ;;  %v121_v63 = vld [vmem:[%s8707_s5 + $0xf0] sm:$0xff]  ;;  %v115_v3 = vld [vmem:[%s8707_s5 + $0xc0] sm:$0xff] }
   0xd   :  { %6631 = vmatprep.subr.mxu0 %v7359_v16  ;;  %6642 = vmatprep.subr.mxu1 %v7359_v16 }
  0x8c   :  { %v54_v4 = vpop.xlane.xlu0 %53 }
  0x8d   :  { %v59_v5 = vmul.f32 0.03125, %v54_v4  ;;  %v119_v4 = vld [vmem:[%s8707_s5 + $0xe0] sm:$0xff] }
  0x8f   :  { %v61_v6 = vsub.f32 %v7434_v0, %v59_v5 }
  0x90   :  { %v57_v7 = vpop.xlane.xlu0 %56 }
  0x91   :  { %v60_v8 = vmul.f32 0.03125, %v57_v7  ;;  %v63_v9 = vmul.f32 %v61_v6, %v61_v6 }
  0x93   :  { %v7443_v10 = vsub.f32 %v43_v1, %v60_v8  ;;  %v65_v11 = vsel %vm51_vm0, %v63_v9, 0.0  ;;  %v116_v1 = vld [vmem:[%s8707_s5 + $0xc8] sm:$0xff]  ;;  %s7361_s5 = smov 112  }
  0x94   :  { %66 = vadd.xlane.f32.xlu1 %v65_v11 }
  0x95   :  { %v64_v12 = vmul.f32 %v7443_v10, %v7443_v10 }
  0x97   :  { %v68_v13 = vsel %vm51_vm0, %v64_v12, 0.0 }
  0x98   :  { %69 = vadd.xlane.f32.xlu1 %v68_v13 }
 0x11d   :  { %v67_v23 = vpop.xlane.xlu1 %66 }
 0x11e   :  { %v71_v24 = vmul.f32 0.03125, %v67_v23 }
 0x120   :  { %v73_v25 = vadd.f32 1e-06, %v71_v24 }
 0x121   :  { %v70_v27 = vpop.xlane.xlu1 %69 }
 0x122   :  { %7246 = vrsqrt.f32 %v73_v25  ;;  %v72_v29 = vmul.f32 0.03125, %v70_v27 }
 0x124   :  { %v74_v31 = vadd.f32 1e-06, %v72_v29 }
 0x126   :  { %7248 = vrsqrt.f32 %v74_v31 }
 0x12f   :  { %v7247_v35 = vpop.eup %7246 }
 0x130   :  { %v77_v36 = vmul.f32 %v7247_v35, %v61_v6 }
 0x132   :  { %v83_v38 = vmul.f32 %v82_v34, %v77_v36 }
 0x133   :  { %v7249_v48 = vpop.eup %7248 }
 0x134   :  { %v89_v39 = vadd.f32 %v88_v37, %v83_v38  ;;  %v78_v51 = vmul.f32 %v7249_v48, %v7443_v10 }
 0x136   :  { %6618 = vmatmul.mubr.msk.f32.vlgmr.msra.gmra.mxu0 %vm51_vm0, %v89_v39  ;;  %6629 = vmatmul.mubr.msk.f32.vlgmr.msra.gmra.mxu1 %vm51_vm0, %v89_v39  ;;  %v84_v56 = vmul.f32 %v82_v34, %v78_v51 }
 0x137   :  { %6632 = vmatpush3.msra.mxu0 %v102_v40  ;;  %6643 = vmatpush3.msra.mxu1 %v106_v41 }
 0x138   :  { %6633 = vmatprep.subr.mxu0 %v7359_v16  ;;  %6644 = vmatprep.subr.mxu1 %v7359_v16  ;;  %v90_v59 = vadd.f32 %v88_v37, %v84_v56 }
 0x139   :  { %6634 = vmatpush3.msra.mxu0 %v101_v42  ;;  %6645 = vmatpush3.msra.mxu1 %v105_v43 }
 0x13a   :  { %6635 = vmatprep.subr.mxu0 %v7359_v16  ;;  %6646 = vmatprep.subr.mxu1 %v7359_v16 }
 0x13b   :  { %6636 = vmatpush3.msra.mxu0 %v100_v44  ;;  %6647 = vmatpush3.msra.mxu1 %v104_v45 }
 0x13c   :  { %6637 = vmatprep.subr.mxu0 %v7359_v16  ;;  %6648 = vmatprep.subr.mxu1 %v7359_v16 }
 0x13d   :  { %6638 = vmatpush3.msra.mxu0 %v99_v46  ;;  %6639 = vmatprep.mubr.msk.f32.mxu0 %vm7360_vm1, %v7359_v16 }
 0x13e   :  { %6649 = vmatpush3.msra.mxu1 %v103_v47  ;;  %6650 = vmatprep.mubr.msk.f32.mxu1 %vm7360_vm1, %v7359_v16 }
 0x13f   :  { %6640 = vmatmul.mubr.msk.f32.vlgmr.msra.gmra.mxu0 %vm51_vm0, %v89_v39  ;;  %6651 = vmatmul.mubr.msk.f32.vlgmr.msra.gmra.mxu1 %vm51_vm0, %v89_v39 }
 0x140   :  { %6653 = vmatprep.subr.mxu0 %v7359_v16  ;;  %6664 = vmatprep.subr.mxu1 %v7359_v16 }
 0x141   :  { %6654 = vmatpush3.msra.mxu0 %v110_v49  ;;  %6665 = vmatpush3.msra.mxu1 %v114_v50 }
 0x142   :  { %6655 = vmatprep.subr.mxu0 %v7359_v16  ;;  %6666 = vmatprep.subr.mxu1 %v7359_v16 }
 0x143   :  { %6656 = vmatpush3.msra.mxu0 %v109_v52  ;;  %6667 = vmatpush3.msra.mxu1 %v113_v53 }
 0x144   :  { %6657 = vmatprep.subr.mxu0 %v7359_v16  ;;  %6668 = vmatprep.subr.mxu1 %v7359_v16 }
 0x145   :  { %6658 = vmatpush3.msra.mxu0 %v108_v54  ;;  %6669 = vmatpush3.msra.mxu1 %v112_v55 }
 0x146   :  { %6659 = vmatprep.subr.mxu0 %v7359_v16  ;;  %6670 = vmatprep.subr.mxu1 %v7359_v16 }
 0x147   :  { %6660 = vmatpush3.msra.mxu0 %v107_v57  ;;  %6661 = vmatprep.mubr.msk.f32.mxu0 %vm7360_vm1, %v7359_v16 }
 0x148   :  { %6671 = vmatpush3.msra.mxu1 %v111_v58  ;;  %6672 = vmatprep.mubr.msk.f32.mxu1 %vm7360_vm1, %v7359_v16 }
 0x149   :  { %6662 = vmatmul.mubr.msk.f32.vlgmr.msra.gmra.mxu0 %vm51_vm0, %v90_v59  ;;  %6673 = vmatmul.mubr.msk.f32.vlgmr.msra.gmra.mxu1 %vm51_vm0, %v90_v59 }
 0x14a   :  { %6675 = vmatprep.subr.mxu0 %v7359_v16  ;;  %6686 = vmatprep.subr.mxu1 %v7359_v16 }
 0x14b   :  { %6676 = vmatpush3.msra.mxu0 %v118_v60  ;;  %6687 = vmatpush3.msra.mxu1 %v122_v61 }
 0x14c   :  { %6677 = vmatprep.subr.mxu0 %v7359_v16  ;;  %6688 = vmatprep.subr.mxu1 %v7359_v16 }
 0x14d   :  { %6678 = vmatpush3.msra.mxu0 %v117_v62  ;;  %6689 = vmatpush3.msra.mxu1 %v121_v63 }
 0x14e   :  { %6679 = vmatprep.subr.mxu0 %v7359_v16  ;;  %6690 = vmatprep.subr.mxu1 %v7359_v16 }
 0x14f   :  { %6680 = vmatpush3.msra.mxu0 %v116_v1  ;;  %6691 = vmatpush3.msra.mxu1 %v120_v2 }
 0x150   :  { %6681 = vmatprep.subr.mxu0 %v7359_v16  ;;  %6692 = vmatprep.subr.mxu1 %v7359_v16 }
 0x151   :  { %6682 = vmatpush3.msra.mxu0 %v115_v3  ;;  %6683 = vmatprep.mubr.msk.f32.mxu0 %vm7360_vm1, %v7359_v16 }
 0x152   :  { %6693 = vmatpush3.msra.mxu1 %v119_v4  ;;  %6694 = vmatprep.mubr.msk.f32.mxu1 %vm7360_vm1, %v7359_v16 }
 0x153   :  { %6684 = vmatmul.mubr.msk.f32.vlgmr.msra.gmra.mxu0 %vm51_vm0, %v90_v59  ;;  %6695 = vmatmul.mubr.msk.f32.vlgmr.msra.gmra.mxu1 %vm51_vm0, %v90_v59 }
 0x154   :  { %6697 = vmatprep.subr.mxu0 %v7359_v16  ;;  %6699 = vmatprep.mubr.msk.f32.mxu0 %vm7360_vm1, %v7359_v16 }
 0x155   :  { %6712 = vmatprep.subr.mxu1 %v7359_v16  ;;  %6714 = vmatprep.mubr.msk.f32.mxu1 %vm7360_vm1, %v7359_v16 }
 0x1f6   :  { %v7623_v5 = vpop.f32.mrf.mxu0  ;;  %v7625_v6 = vpop.f32.mrf.mxu1 }
 0x1f7   :  { %706 = vrot.lane.b32.xlu0 %v7623_v5, %s7361_s5  ;;  %784 = vrot.lane.b32.xlu1 %v7625_v6, %s7361_s5 }
 0x1f8   :  { %v6619_v7 = vpop.f32.mrf.mxu0  ;;  %v6630_v8 = vpop.f32.mrf.mxu1 }
 0x1ff   :  { %v7631_v9 = vpop.f32.mrf.mxu0  ;;  %v7633_v10 = vpop.f32.mrf.mxu1 }
 0x200   :  { %861 = vrot.lane.b32.xlu1 %v7631_v9, %s7361_s5 }
 0x201   :  { %v6641_v11 = vpop.f32.mrf.mxu0  ;;  %v6652_v12 = vpop.f32.mrf.mxu1 }
 0x204   :  { %938 = vrot.lane.b32.xlu1 %v7633_v10, %s7361_s5 }
 0x209   :  { %v7639_v13 = vpop.f32.mrf.mxu0  ;;  %v7641_v14 = vpop.f32.mrf.mxu1 }
 0x20a   :  { %1092 = vrot.lane.b32.xlu1 %v7641_v14, %s7361_s5  ;;  %1015 = vrot.lane.b32.xlu0 %v7639_v13, %s7361_s5 }
 0x20b   :  { %v6663_v15 = vpop.f32.mrf.mxu0  ;;  %v6674_v17 = vpop.f32.mrf.mxu1 }
 0x213   :  { %v7647_v18 = vpop.f32.mrf.mxu0  ;;  %v7649_v19 = vpop.f32.mrf.mxu1 }
 0x214   :  { %1246 = vrot.lane.b32.xlu1 %v7649_v19, %s7361_s5  ;;  %1169 = vrot.lane.b32.xlu0 %v7647_v18, %s7361_s5 }
 0x215   :  { %v6685_v20 = vpop.f32.mrf.mxu0  ;;  %v6696_v21 = vpop.f32.mrf.mxu1 }
 0x269   :  { %v707_v22 = vpop.permute.xlu0 %706  ;;  %v785_v23 = vpop.permute.xlu1 %784 }
 0x26a   :  { %6698 = vmatpush3.xpose.msk.msra.mxu0 %vm708_vm2, %v707_v22 }
 0x26b   :  { %6702 = vmatprep.subr.mxu0 %v7359_v16 }
 0x26d   :  { %6700 = vmatmul.mubr.msk.f32.vlgmr.msra.gmra.mxu0 %vm708_vm2, %v7623_v5 }
 0x26e   :  { %6703 = vmatpush3.xpose.msk.msra.mxu0 %vm708_vm2, %v785_v23  ;;  %6704 = vmatprep.mubr.msk.f32.mxu0 %vm7360_vm1, %v7359_v16 }
 0x26f   :  { %6707 = vmatprep.subr.mxu0 %v7359_v16 }
 0x271   :  { %6705 = vmatmul.mubr.msk.f32.vlgmr.msra.gmra.mxu0 %vm708_vm2, %v7625_v6 }
 0x272   :  { %v862_v24 = vpop.permute.xlu1 %861  ;;  %6709 = vmatprep.mubr.msk.f32.mxu0 %vm7360_vm1, %v7359_v16 }
 0x273   :  { %6708 = vmatpush3.xpose.msk.msra.mxu0 %vm708_vm2, %v862_v24 }
 0x274   :  { %6717 = vmatprep.subr.mxu0 %v7359_v16 }
 0x276   :  { %v939_v25 = vpop.permute.xlu1 %938  ;;  %6710 = vmatmul.mubr.msk.f32.vlgmr.msra.gmra.mxu0 %vm708_vm2, %v7631_v9 }
 0x277   :  { %6713 = vmatpush3.xpose.msk.msra.mxu1 %vm708_vm2, %v939_v25  ;;  %6719 = vmatprep.mubr.msk.f32.mxu0 %vm7360_vm1, %v7359_v16 }
 0x278   :  { %6722 = vmatprep.subr.mxu1 %v7359_v16 }
 0x27a   :  { %6715 = vmatmul.mubr.msk.f32.vlgmr.msra.gmra.mxu1 %vm708_vm2, %v7633_v10 }
 0x27b   :  { %6724 = vmatprep.mubr.msk.f32.mxu1 %vm7360_vm1, %v7359_v16 }
 0x27c   :  { %v1093_v26 = vpop.permute.xlu1 %1092  ;;  %v1016_v27 = vpop.permute.xlu0 %1015 }
 0x27d   :  { %6718 = vmatpush3.xpose.msk.msra.mxu0 %vm708_vm2, %v1016_v27  ;;  %6723 = vmatpush3.xpose.msk.msra.mxu1 %vm708_vm2, %v1093_v26 }
 0x27e   :  { %6732 = vmatprep.subr.mxu1 %v7359_v16  ;;  %6727 = vmatprep.subr.mxu0 %v7359_v16 }
 0x280   :  { %6720 = vmatmul.mubr.msk.f32.vlgmr.msra.gmra.mxu0 %vm708_vm2, %v7639_v13  ;;  %6725 = vmatmul.mubr.msk.f32.vlgmr.msra.gmra.mxu1 %vm708_vm2, %v7641_v14 }
 0x281   :  { %6729 = vmatprep.mubr.msk.f32.mxu0 %vm7360_vm1, %v7359_v16  ;;  %6734 = vmatprep.mubr.msk.f32.mxu1 %vm7360_vm1, %v7359_v16 }
 0x286   :  { %v1247_v29 = vpop.permute.xlu1 %1246  ;;  %v1170_v31 = vpop.permute.xlu0 %1169 }
 0x287   :  { %6728 = vmatpush3.xpose.msk.msra.mxu0 %vm708_vm2, %v1170_v31  ;;  %6733 = vmatpush3.xpose.msk.msra.mxu1 %vm708_vm2, %v1247_v29 }
 0x288   :  { %6742 = vmatprep.subr.mxu1 %v7359_v16  ;;  %6737 = vmatprep.subr.mxu0 %v7359_v16 }
 0x28a   :  { %6730 = vmatmul.mubr.msk.f32.vlgmr.msra.gmra.mxu0 %vm708_vm2, %v7647_v18  ;;  %6735 = vmatmul.mubr.msk.f32.vlgmr.msra.gmra.mxu1 %vm708_vm2, %v7649_v19 }
 0x28b   :  { %6739 = vmatprep.mubr.msk.f32.mxu0 %vm7360_vm1, %v7359_v16  ;;  %6744 = vmatprep.mubr.msk.f32.mxu1 %vm7360_vm1, %v7359_v16 }
 0x32d   :  { %v779_v34 = vpop.f32.mrf.mxu0 }
 0x32e   :  { %v1323_v35 = vsel %vm1322_vm3, %v779_v34, -inf }
 0x32f   :  { %1324 = vmax.xlane.f32.xlu0 %v1323_v35  ;;  %v6701_v36 = vpop.f32.mrf.mxu0 }
 0x331   :  { %v856_v37 = vpop.f32.mrf.mxu0 }
 0x332   :  { %v1326_v38 = vsel %vm1322_vm3, %v856_v37, -inf }
 0x333   :  { %1327 = vmax.xlane.f32.xlu1 %v1326_v38  ;;  %v6706_v39 = vpop.f32.mrf.mxu0 }
 0x336   :  { %v933_v40 = vpop.f32.mrf.mxu0 }
 0x337   :  { %v1329_v45 = vsel %vm1322_vm3, %v933_v40, -inf }
 0x338   :  { %v6711_v41 = vpop.f32.mrf.mxu0 }
 0x33a   :  { %v1010_v42 = vpop.f32.mrf.mxu1 }
 0x33b   :  { %v1332_v43 = vsel %vm1322_vm3, %v1010_v42, -inf }
 0x33c   :  { %v6716_v44 = vpop.f32.mrf.mxu1  ;;  %1333 = vmax.xlane.f32.xlu0 %v1332_v43 }
 0x340   :  { %v7707_v46 = vpop.f32.mrf.mxu0  ;;  %v1164_v47 = vpop.f32.mrf.mxu1  ;;  %1330 = vmax.xlane.f32.xlu0 %v1329_v45 }
 0x341   :  { %v1338_v48 = vsel %vm1322_vm3, %v1164_v47, -inf  ;;  %v1335_v51 = vsel %vm1322_vm3, %v7707_v46, -inf }
 0x342   :  { %v6726_v49 = vpop.f32.mrf.mxu1  ;;  %1339 = vmax.xlane.f32.xlu1 %v1338_v48  ;;  %v6721_v50 = vpop.f32.mrf.mxu0 }
 0x344   :  { %1336 = vmax.xlane.f32.xlu0 %v1335_v51 }
 0x34a   :  { %v1241_v52 = vpop.f32.mrf.mxu0  ;;  %v7712_v53 = vpop.f32.mrf.mxu1 }
 0x34b   :  { %v1341_v54 = vsel %vm1322_vm3, %v1241_v52, -inf  ;;  %v1344_v57 = vsel %vm1322_vm3, %v7712_v53, -inf }
 0x34c   :  { %v6736_v55 = vpop.f32.mrf.mxu1  ;;  %1342 = vmax.xlane.f32.xlu0 %v1341_v54  ;;  %v6731_v56 = vpop.f32.mrf.mxu0 }
 0x353   :  { %1487 = vrot.lane.b32.xlu1 %v7625_v6, %s7362_s19 }
 0x357   :  { %1563 = vrot.lane.b32.xlu1 %v7631_v9, %s7362_s19 }
 0x362   :  { %1411 = vrot.lane.b32.xlu0 %v7623_v5, %s7362_s19 }
 0x37b   :  { %1345 = vmax.xlane.f32.xlu1 %v1344_v57 }
 0x38c   :  { %1639 = vrot.lane.b32.xlu1 %v7633_v10, %s7362_s19 }
 0x3b8   :  { %v1325_v58 = vpop.xlane.xlu0 %1324 }
 0x3b9   :  { %v1347_v59 = vsub.f32 %v779_v34, %v1325_v58 }
 0x3bb   :  { %v1355_v60 = vmul.f32 1.442695, %v1347_v59 }
 0x3bc   :  { %v1328_v61 = vpop.xlane.xlu1 %1327 }
 0x3bd   :  { %7250 = vpow2.f32 %v1355_v60  ;;  %v1348_v62 = vsub.f32 %v856_v37, %v1328_v61 }
 0x3bf   :  { %v1357_v63 = vmul.f32 1.442695, %v1348_v62 }
 0x3c1   :  { %7252 = vpow2.f32 %v1357_v63 }
 0x3c5   :  { %v1334_v1 = vpop.xlane.xlu0 %1333 }
 0x3c6   :  { %v1350_v2 = vsub.f32 %v1010_v42, %v1334_v1 }
 0x3c8   :  { %v1361_v3 = vmul.f32 1.442695, %v1350_v2 }
 0x3c9   :  { %v1331_v4 = vpop.xlane.xlu0 %1330 }
 0x3ca   :  { %v7725_v5 = vpop.eup %7250  ;;  %7254 = vpow2.f32 %v1361_v3  ;;  %v1349_v6 = vsub.f32 %v933_v40, %v1331_v4 }
 0x3cb   :  { %v1340_v7 = vpop.xlane.xlu1 %1339  ;;  %v1371_v8 = vsel %vm1322_vm3, %v7725_v5, 0.0 }
 0x3cc   :  { %v1359_v9 = vmul.f32 1.442695, %v1349_v6  ;;  %1372 = vadd.xlane.f32.xlu0 %v1371_v8  ;;  %v1352_v25 = vsub.f32 %v1164_v47, %v1340_v7  ;;  %v690_v7 = vld [vmem:[%s8708_s6 + $0x8] sm:$0xff] }
 0x3cd   :  { %v1337_v12 = vpop.xlane.xlu0 %1336 }
 0x3ce   :  { %v7729_v10 = vpop.eup %7252  ;;  %7256 = vpow2.f32 %v1359_v9  ;;  %v1365_v26 = vmul.f32 1.442695, %v1352_v25  ;;  %v1351_v27 = vsub.f32 %v7707_v46, %v1337_v12  ;;  %v691_v12 = vld [vmem:[%s8708_s6 + $0x10] sm:$0xff] }
 0x3cf   :  { %v1488_v11 = vpop.permute.xlu1 %1487  ;;  %v1374_v15 = vsel %vm1322_vm3, %v7729_v10, 0.0 }
 0x3d0   :  { %6743 = vmatpush3.msra.mxu1 %v1488_v11  ;;  %1375 = vadd.xlane.f32.xlu1 %v1374_v15  ;;  %7258 = vpow2.f32 %v1365_v26  ;;  %v1363_v29 = vmul.f32 1.442695, %v1351_v27  ;;  %v692_v11 = vld [vmem:[%s8708_s6 + $0x18] sm:$0xff]  ;;  %v694_v15 = vld [vmem:[%s8708_s6 + $0x28] sm:$0xff] }
 0x3d1   :  { %6752 = vmatprep.subr.mxu1 %v7359_v16  ;;  %v700_v26 = vld [vmem:[%s8708_s6 + $0x58] sm:$0xff] }
 0x3d2   :  { %7260 = vpow2.f32 %v1363_v29  ;;  %v699_v29 = vld [vmem:[%s8708_s6 + $0x50] sm:$0xff] }
 0x3d3   :  { %v1564_v34 = vpop.permute.xlu1 %1563 }
 0x3d5   :  { %v1343_v17 = vpop.xlane.xlu0 %1342 }
 0x3d6   :  { %v1353_v31 = vsub.f32 %v1241_v52, %v1343_v17 }
 0x3d7   :  { %v7255_v20 = vpop.eup %7254 }
 0x3d8   :  { %v1380_v21 = vsel %vm1322_vm3, %v7255_v20, 0.0  ;;  %v1367_v35 = vmul.f32 1.442695, %v1353_v31 }
 0x3d9   :  { %v1412_v22 = vpop.permute.xlu0 %1411  ;;  %1381 = vadd.xlane.f32.xlu1 %v1380_v21 }
 0x3da   :  { %6738 = vmatpush3.msra.mxu0 %v1412_v22  ;;  %7262 = vpow2.f32 %v1367_v35  ;;  %v696_v22 = vld [vmem:[%s8708_s6 + $0x38] sm:$0xff] }
 0x3db   :  { %v7257_v23 = vpop.eup %7256  ;;  %6747 = vmatprep.subr.mxu0 %v7359_v16 }
 0x3dc   :  { %v1377_v24 = vsel %vm1322_vm3, %v7257_v23, 0.0 }
 0x3dd   :  { %1378 = vadd.xlane.f32.xlu0 %v1377_v24  ;;  %v695_v24 = vld [vmem:[%s8708_s6 + $0x30] sm:$0xff] }
 0x3ea   :  { %1791 = vrot.lane.b32.xlu1 %v7641_v14, %s7362_s19  ;;  %v7259_v14 = vpop.eup %7258 }
 0x3eb   :  { %v1386_v39 = vsel %vm1322_vm3, %v7259_v14, 0.0 }
 0x3f3   :  { %1715 = vrot.lane.b32.xlu0 %v7639_v13, %s7362_s19  ;;  %v7261_v13 = vpop.eup %7260 }
 0x3f4   :  { %v1383_v40 = vsel %vm1322_vm3, %v7261_v13, 0.0  ;;  %v7745_v41 = vpop.eup %7262 }
 0x3f5   :  { %v1389_v42 = vsel %vm1322_vm3, %v7745_v41, 0.0 }
 0x404   :  { %v1346_v36 = vpop.xlane.xlu1 %1345 }
 0x405   :  { %v1354_v37 = vsub.f32 %v7712_v53, %v1346_v36  ;;  %v697_v36 = vld [vmem:[%s8708_s6 + $0x40] sm:$0xff] }
 0x407   :  { %v1369_v38 = vmul.f32 1.442695, %v1354_v37 }
 0x408   :  { %v1640_v45 = vpop.permute.xlu1 %1639 }
 0x409   :  { %7264 = vpow2.f32 %v1369_v38  ;;  %v704_v38 = vld [vmem:[%s8708_s6 + $0x78] sm:$0xff] }
 0x40e   :  { %1387 = vadd.xlane.f32.xlu1 %v1386_v39  ;;  %v703_v39 = vld [vmem:[%s8708_s6 + $0x70] sm:$0xff] }
 0x412   :  { %1384 = vadd.xlane.f32.xlu0 %v1383_v40  ;;  %v702_v40 = vld [vmem:[%s8708_s6 + $0x68] sm:$0xff] }
 0x416   :  { %v7749_v43 = vpop.eup %7264  ;;  %1390 = vadd.xlane.f32.xlu0 %v1389_v42  ;;  %v701_v42 = vld [vmem:[%s8708_s6 + $0x60] sm:$0xff] }
 0x417   :  { %v1392_v44 = vsel %vm1322_vm3, %v7749_v43, 0.0 }
 0x418   :  { %1393 = vadd.xlane.f32.xlu1 %v1392_v44 }
 0x429   :  { %1943 = vrot.lane.b32.xlu1 %v7649_v19, %s7362_s19 }
 0x42c   :  { %1867 = vrot.lane.b32.xlu0 %v7647_v18, %s7362_s19 }
 0x455   :  { %v1373_v46 = vpop.xlane.xlu0 %1372 }
 0x456   :  { %7266 = vrcp.f32 %v1373_v46 }
 0x459   :  { %v1376_v47 = vpop.xlane.xlu1 %1375 }
 0x45a   :  { %7268 = vrcp.f32 %v1376_v47 }
 0x462   :  { %v1382_v48 = vpop.xlane.xlu1 %1381 }
 0x463   :  { %v7267_v49 = vpop.eup %7266  ;;  %7270 = vrcp.f32 %v1382_v48 }
 0x464   :  { %v1403_v50 = vmul.f32 %v7267_v49, %v7725_v5 }
 0x466   :  { %v1379_v51 = vpop.xlane.xlu0 %1378  ;;  %6740 = vmatmul.mubr.msk.f32.vlgmr.msra.gmra.mxu0 %vm1322_vm3, %v1403_v50  ;;  %v1792_v54 = vpop.permute.xlu1 %1791 }
 0x467   :  { %v7269_v52 = vpop.eup %7268  ;;  %7272 = vrcp.f32 %v1379_v51  ;;  %6748 = vmatpush3.msra.mxu0 %v1564_v34  ;;  %6749 = vmatprep.mubr.msk.f32.mxu0 %vm7360_vm1, %v7359_v16  ;;  %v698_v34 = vld [vmem:[%s8708_s6 + $0x48] sm:$0xff] }
 0x468   :  { %v1404_v18 = vmul.f32 %v7269_v52, %v7729_v10  ;;  %6757 = vmatprep.subr.mxu0 %v7359_v16  ;;  %v689_v10 = vld [vmem:[%s8708_s6] sm:$0xff] }
 0x46a   :  { %6745 = vmatmul.mubr.msk.f32.vlgmr.msra.gmra.mxu1 %vm1322_vm3, %v1404_v18  ;;  %v1716_v57 = vpop.permute.xlu0 %1715  ;;  %v2611_v18 = vsub.s32 6, %v7487_v28 }
 0x46b   :  { %6753 = vmatpush3.msra.mxu1 %v1640_v45  ;;  %6754 = vmatprep.mubr.msk.f32.mxu1 %vm7360_vm1, %v7359_v16 }
 0x46c   :  { %6762 = vmatprep.subr.mxu1 %v7359_v16 }
 0x470   :  { %v7271_v19 = vpop.eup %7270 }
 0x471   :  { %v1406_v53 = vmul.f32 %v7271_v19, %v7255_v20  ;;  %v693_v20 = vld [vmem:[%s8708_s6 + $0x20] sm:$0xff]  ;;  %s6200_s6 = sshll.u32 %s7363_s15, 4  ;;  %s6201_s6 = int_to_ptr.vmem [resolvable:$true] %s6200_s6 }
 0x472   :  { %s7337_s16 = scalar_lea.vmem %s6201_s6, 256  ;;  %p7342_p1 = scmp.lt.s32.totalorder %s6201_s6, %s6201_s6 }
 0x473   :  { %6755 = vmatmul.mubr.msk.f32.vlgmr.msra.gmra.mxu1 %vm1322_vm3, %v1406_v53  ;;  %p7338_p0 = scmp.ne.s32.totalorder %s6201_s6, %s7337_s16  ;;  %p7343_p2 = scmp.lt.s32.totalorder %s7337_s16, %s7337_s16 }
 0x474   :  { %v7273_v55 = vpop.eup %7272  ;;  %6763 = vmatpush3.msra.mxu1 %v1792_v54  ;;  %6764 = vmatprep.mubr.msk.f32.mxu1 %vm7360_vm1, %v7359_v16 }
 0x475   :  { %v1405_v56 = vmul.f32 %v7273_v55, %v7257_v23  ;;  %6772 = vmatprep.subr.mxu1 %v7359_v16  ;;  %p7344_p3 = por %p7343_p2, %p7342_p1 }
 0x477   :  { %6750 = vmatmul.mubr.msk.f32.vlgmr.msra.gmra.mxu0 %vm1322_vm3, %v1405_v56  ;;  %v2612_v56 = vrot.slane %v7493_v32, %v2611_v18  ;;  %v7893_v32 = vld [vmem:[%s8703_s1 + $0x8] sm:$0xff]  ;;  %p7345_p4 = pnand %p7344_p3, %p7338_p0 }
 0x478   :  { %6758 = vmatpush3.msra.mxu0 %v1716_v57  ;;  %6759 = vmatprep.mubr.msk.f32.mxu0 %vm7360_vm1, %v7359_v16 }
 0x479   :  { %6767 = vmatprep.subr.mxu0 %v7359_v16 }
 0x497   :  { %v1388_v58 = vpop.xlane.xlu1 %1387 }
 0x498   :  { %7274 = vrcp.f32 %v1388_v58 }
 0x49b   :  { %v1385_v59 = vpop.xlane.xlu0 %1384 }
 0x49c   :  { %7276 = vrcp.f32 %v1385_v59 }
 0x49f   :  { %v1391_v60 = vpop.xlane.xlu0 %1390 }
 0x4a0   :  { %7278 = vrcp.f32 %v1391_v60 }
 0x4a1   :  { %v1394_v61 = vpop.xlane.xlu1 %1393 }
 0x4a2   :  { %7280 = vrcp.f32 %v1394_v61  ;;  %v44_v61 = vld [vmem:[%s8703_s1] sm:$0xff] }
 0x4a3   :  { %v1868_v4 = vpop.permute.xlu0 %1867 }
 0x4a5   :  { %v7275_v62 = vpop.eup %7274  ;;  %v1944_v1 = vpop.permute.xlu1 %1943 }
 0x4a6   :  { %v1408_v63 = vmul.f32 %v7275_v62, %v7259_v14 }
 0x4a8   :  { %6765 = vmatmul.mubr.msk.f32.vlgmr.msra.gmra.mxu1 %vm1322_vm3, %v1408_v63  ;;  %v2656_v63 = vsel %vm2655_vm4, %v44_v61, 0.0 }
 0x4a9   :  { %v7277_v2 = vpop.eup %7276  ;;  %6773 = vmatpush3.msra.mxu1 %v1944_v1  ;;  %6774 = vmatprep.mubr.msk.f32.mxu1 %vm7360_vm1, %v7359_v16  ;;  %v46_v1 = vld [vmem:[%s8703_s1 + $0x10] sm:$0xff] }
 0x4aa   :  { %v1407_v3 = vmul.f32 %v7277_v2, %v7261_v13  ;;  %6784 = vmatprep.subr.mxu1 %v7359_v16  ;;  %v2662_v2 = vsel %vm2655_vm4, %v46_v1, 0.0 }
 0x4ac   :  { %6760 = vmatmul.mubr.msk.f32.vlgmr.msra.gmra.mxu0 %vm1322_vm3, %v1407_v3 }
 0x4ad   :  { %v7279_v5 = vpop.eup %7278  ;;  %6768 = vmatpush3.msra.mxu0 %v1868_v4  ;;  %6769 = vmatprep.mubr.msk.f32.mxu0 %vm7360_vm1, %v7359_v16 }
 0x4ae   :  { %v1409_v6 = vmul.f32 %v7279_v5, %v7745_v41  ;;  %6777 = vmatprep.subr.mxu0 %v7359_v16 }
 0x4af   :  { %v7281_v8 = vpop.eup %7280 }
 0x4b0   :  { %6770 = vmatmul.mubr.msk.f32.vlgmr.msra.gmra.mxu0 %vm1322_vm3, %v1409_v6  ;;  %v1410_v9 = vmul.f32 %v7281_v8, %v7749_v43 }
 0x4b1   :  { %6778 = vmatpush3.msra.mxu0 %v690_v7  ;;  %6781 = vmatprep.mubr.msk.f32.mxu0 %vm7360_vm1, %v7359_v16 }
 0x4b2   :  { %6775 = vmatmul.mubr.msk.f32.vlgmr.msra.gmra.mxu1 %vm1322_vm3, %v1410_v9  ;;  %6779 = vmatprep.subr.mxu0 %v7359_v16 }
 0x4b3   :  { %6780 = vmatpush3.msra.mxu0 %v689_v10  ;;  %6785 = vmatpush3.msra.mxu1 %v692_v11 }
 0x4b4   :  { %6786 = vmatprep.subr.mxu1 %v7359_v16  ;;  %6788 = vmatprep.mubr.msk.f32.mxu1 %vm7360_vm1, %v7359_v16 }
 0x4b5   :  { %6787 = vmatpush3.msra.mxu1 %v691_v12  ;;  %6791 = vmatprep.subr.mxu0 %v7359_v16 }
 0x4b6   :  { %6798 = vmatprep.subr.mxu1 %v7359_v16 }
 0x526   :  { %v1483_v17 = vpop.f32.mrf.mxu0 }
 0x527   :  { %6782 = vmatmul.mubr.msk.f32.vlgmr.msra.gmra.mxu0 %vm708_vm2, %v1483_v17 }
 0x528   :  { %v6741_v21 = vpop.f32.mrf.mxu0  ;;  %6792 = vmatpush3.msra.mxu0 %v694_v15  ;;  %6795 = vmatprep.mubr.msk.f32.mxu0 %vm7360_vm1, %v7359_v16 }
 0x529   :  { %6793 = vmatprep.subr.mxu0 %v7359_v16 }
 0x52a   :  { %v1559_v23 = vpop.f32.mrf.mxu1  ;;  %6794 = vmatpush3.msra.mxu0 %v693_v20  ;;  %v7334_v20 = vld [vmem:[%s8702_s0 + $0x8] sm:$0xff] }
 0x52b   :  { %6789 = vmatmul.mubr.msk.f32.vlgmr.msra.gmra.mxu1 %vm708_vm2, %v1559_v23  ;;  %6805 = vmatprep.subr.mxu0 %v7359_v16 }
 0x52c   :  { %v6746_v25 = vpop.f32.mrf.mxu1  ;;  %6799 = vmatpush3.msra.mxu1 %v696_v22  ;;  %6802 = vmatprep.mubr.msk.f32.mxu1 %vm7360_vm1, %v7359_v16  ;;  %v47_v22 = vld [vmem:[%s8703_s1 + $0x18] sm:$0xff] }
 0x52d   :  { %6800 = vmatprep.subr.mxu1 %v7359_v16 }
 0x52e   :  { %6801 = vmatpush3.msra.mxu1 %v695_v24  ;;  %v2665_v24 = vsel %vm2655_vm4, %v47_v22, 0.0 }
 0x52f   :  { %6812 = vmatprep.subr.mxu1 %v7359_v16 }
 0x533   :  { %v1711_v27 = vpop.f32.mrf.mxu1 }
 0x534   :  { %6803 = vmatmul.mubr.msk.f32.vlgmr.msra.gmra.mxu1 %vm708_vm2, %v1711_v27 }
 0x535   :  { %v6756_v31 = vpop.f32.mrf.mxu1  ;;  %6813 = vmatpush3.msra.mxu1 %v700_v26  ;;  %6816 = vmatprep.mubr.msk.f32.mxu1 %vm7360_vm1, %v7359_v16 }
 0x536   :  { %6814 = vmatprep.subr.mxu1 %v7359_v16 }
 0x537   :  { %v1635_v35 = vpop.f32.mrf.mxu0  ;;  %6815 = vmatpush3.msra.mxu1 %v699_v29 }
 0x538   :  { %6796 = vmatmul.mubr.msk.f32.vlgmr.msra.gmra.mxu0 %vm708_vm2, %v1635_v35  ;;  %6826 = vmatprep.subr.mxu1 %v7359_v16 }
 0x539   :  { %v6751_v37 = vpop.f32.mrf.mxu0  ;;  %6806 = vmatpush3.msra.mxu0 %v698_v34  ;;  %6809 = vmatprep.mubr.msk.f32.mxu0 %vm7360_vm1, %v7359_v16 }
 0x53a   :  { %6807 = vmatprep.subr.mxu0 %v7359_v16 }
 0x53b   :  { %6808 = vmatpush3.msra.mxu0 %v697_v36 }
 0x53c   :  { %6819 = vmatprep.subr.mxu0 %v7359_v16 }
 0x568   :  { %v1863_v14 = vpop.f32.mrf.mxu1 }
 0x569   :  { %6817 = vmatmul.mubr.msk.f32.vlgmr.msra.gmra.mxu1 %vm708_vm2, %v1863_v14 }
 0x56a   :  { %v6766_v13 = vpop.f32.mrf.mxu1  ;;  %6827 = vmatpush3.msra.mxu1 %v704_v38  ;;  %6830 = vmatprep.mubr.msk.f32.mxu1 %vm7360_vm1, %v7359_v16 }
 0x56b   :  { %6828 = vmatprep.subr.mxu1 %v7359_v16 }
 0x56c   :  { %v1787_v41 = vpop.f32.mrf.mxu0  ;;  %6829 = vmatpush3.msra.mxu1 %v703_v39 }
 0x56d   :  { %6810 = vmatmul.mubr.msk.f32.vlgmr.msra.gmra.mxu0 %vm708_vm2, %v1787_v41  ;;  %6844 = vmatprep.subr.mxu1 %v7359_v16 }
 0x56e   :  { %v6761_v43 = vpop.f32.mrf.mxu0  ;;  %6820 = vmatpush3.msra.mxu0 %v702_v40  ;;  %6823 = vmatprep.mubr.msk.f32.mxu0 %vm7360_vm1, %v7359_v16 }
 0x56f   :  { %6821 = vmatprep.subr.mxu0 %v7359_v16  ;;  %v2728_v43 = vld [vmem:[%s8709_s7 + $0x18] sm:$0xff] }
 0x570   :  { %v1939_v44 = vpop.f32.mrf.mxu0  ;;  %6822 = vmatpush3.msra.mxu0 %v701_v42 }
 0x571   :  { %6824 = vmatmul.mubr.msk.f32.vlgmr.msra.gmra.mxu0 %vm708_vm2, %v1939_v44  ;;  %6833 = vmatprep.subr.mxu0 %v7359_v16  ;;  %v2732_v44 = vld [vmem:[%s8709_s7 + $0x38] sm:$0xff] }
 0x572   :  { %v2015_v45 = vpop.f32.mrf.mxu1  ;;  %v6771_v46 = vpop.f32.mrf.mxu0  ;;  %6841 = vmatprep.mubr.msk.f32.mxu0 %vm7360_vm1, %v7359_v16  ;;  %6834 = vmatpush3.msra.mxu0 %v2728_v43 }
 0x573   :  { %6831 = vmatmul.mubr.msk.f32.vlgmr.msra.gmra.mxu1 %vm708_vm2, %v2015_v45  ;;  %v2727_v45 = vld [vmem:[%s8709_s7 + $0x10] sm:$0xff]  ;;  %6835 = vmatprep.subr.mxu0 %v7359_v16 }
 0x574   :  { %v6776_v47 = vpop.f32.mrf.mxu1  ;;  %6852 = vmatprep.mubr.msk.f32.mxu1 %vm7360_vm1, %v7359_v16  ;;  %6845 = vmatpush3.msra.mxu1 %v2732_v44  ;;  %v2731_v46 = vld [vmem:[%s8709_s7 + $0x30] sm:$0xff] }
 0x575   :  { %6846 = vmatprep.subr.mxu1 %v7359_v16  ;;  %v2726_v47 = vld [vmem:[%s8709_s7 + $0x8] sm:$0xff]  ;;  %6836 = vmatpush3.msra.mxu0 %v2727_v45  ;;  %v2747_v44 = vld [vmem:[%s8709_s7 + $0xb0] sm:$0xff] }
 0x576   :  { %6847 = vmatpush3.msra.mxu1 %v2731_v46  ;;  %6837 = vmatprep.subr.mxu0 %v7359_v16  ;;  %v2742_v46 = vld [vmem:[%s8709_s7 + $0x88] sm:$0xff] }
 0x577   :  { %6848 = vmatprep.subr.mxu1 %v7359_v16  ;;  %6838 = vmatpush3.msra.mxu0 %v2726_v47  ;;  %v2746_v47 = vld [vmem:[%s8709_s7 + $0xa8] sm:$0xff] }
 0x578   :  { %6839 = vmatprep.subr.mxu0 %v7359_v16 }
 0x5e7   :  { %v2088_v48 = vpop.f32.mrf.mxu0 }
 0x5e9   :  { %v6783_v49 = vpop.f32.mrf.mxu0 }
 0x5ea   :  { %v2725_v49 = vld [vmem:[%s8709_s7] sm:$0xff] }
 0x5eb   :  { %v2161_v50 = vpop.f32.mrf.mxu1  ;;  %6840 = vmatpush3.msra.mxu0 %v2725_v49  ;;  %v2745_v49 = vld [vmem:[%s8709_s7 + $0xa0] sm:$0xff] }
 0x5ec   :  { %v2603_v53 = vadd.f32 %v2161_v50, %v2088_v48  ;;  %v2730_v48 = vld [vmem:[%s8709_s7 + $0x28] sm:$0xff]  ;;  %v2729_v50 = vld [vmem:[%s8709_s7 + $0x20] sm:$0xff]  ;;  %6855 = vmatprep.subr.mxu0 %v7359_v16 }
 0x5ed   :  { %v6790_v51 = vpop.f32.mrf.mxu1  ;;  %6849 = vmatpush3.msra.mxu1 %v2730_v48  ;;  %v2741_v48 = vld [vmem:[%s8709_s7 + $0x80] sm:$0xff] }
 0x5ee   :  { %6850 = vmatprep.subr.mxu1 %v7359_v16 }
 0x5ef   :  { %6851 = vmatpush3.msra.mxu1 %v2729_v50 }
 0x5f0   :  { %6866 = vmatprep.subr.mxu1 %v7359_v16 }
 0x5f4   :  { %v2307_v52 = vpop.f32.mrf.mxu1 }
 0x5f6   :  { %v6804_v19 = vpop.f32.mrf.mxu1 }
 0x5f8   :  { %v2234_v54 = vpop.f32.mrf.mxu0 }
 0x5f9   :  { %v2605_v55 = vadd.f32 %v2603_v53, %v2234_v54 }
 0x5fa   :  { %v6797_v57 = vpop.f32.mrf.mxu0 }
 0x5fb   :  { %v2607_v58 = vadd.f32 %v2605_v55, %v2307_v52 }
 0x5fd   :  { %v2613_v59 = vadd.f32 %v2612_v56, %v2607_v58 }
 0x5ff   :  { %v7882_v60 = vadd.f32 %v2613_v59, %v7434_v0  ;;  %v2659_v0 = vsel %vm2655_vm4, %v7893_v32, 0.0 }
 0x601   :  { %v2617_v62 = vsel %vm51_vm0, %v7882_v60, 0.0 }
 0x602   :  { %2618 = vadd.xlane.f32.xlu0 %v2617_v62 }
 0x606   :  { %2657 = vadd.xlane.f32.xlu0 %v2656_v63 }
 0x60a   :  { %2660 = vadd.xlane.f32.xlu0 %v2659_v0 }
 0x60e   :  { %2663 = vadd.xlane.f32.xlu0 %v2662_v2 }
 0x629   :  { %v2453_v3 = vpop.f32.mrf.mxu1 }
 0x62b   :  { %v6818_v4 = vpop.f32.mrf.mxu1 }
 0x62d   :  { %v2380_v5 = vpop.f32.mrf.mxu0 }
 0x62e   :  { %v2604_v7 = vadd.f32 %v2453_v3, %v2380_v5 }
 0x62f   :  { %v6811_v6 = vpop.f32.mrf.mxu0 }
 0x631   :  { %v2526_v8 = vpop.f32.mrf.mxu0 }
 0x632   :  { %v2606_v9 = vadd.f32 %v2604_v7, %v2526_v8  ;;  %v2645_v7 = vsub.s32 2, %v7487_v28 }
 0x633   :  { %v2599_v10 = vpop.f32.mrf.mxu1  ;;  %v6825_v11 = vpop.f32.mrf.mxu0 }
 0x634   :  { %v2608_v12 = vadd.f32 %v2606_v9, %v2599_v10  ;;  %v2651_v9 = vsub.s32 3, %v7487_v28  ;;  %v7335_v10 = vld [vmem:[%s8704_s2] sm:$0xff] }
 0x635   :  { %v6832_v15 = vpop.f32.mrf.mxu1  ;;  %v7982_v11 = vrot.slane %v7335_v10, %v2645_v7  ;;  %v2750_v7 = vld [vmem:[%s8709_s7 + $0xc8] sm:$0xff] }
 0x636   :  { %v2614_v17 = vadd.f32 %v2612_v56, %v2608_v12  ;;  %v50_v15 = vld [vmem:[%s8705_s3] sm:$0x3] }
 0x638   :  { %v7904_v21 = vadd.f32 %v7334_v20, %v2614_v17  ;;  %v7988_v20 = vrot.slane %v7335_v10, %v2651_v9 }
 0x63a   :  { %v2620_v23 = vsel %vm51_vm0, %v7904_v21, 0.0 }
 0x63b   :  { %2621 = vadd.xlane.f32.xlu1 %v2620_v23 }
 0x63f   :  { %2666 = vadd.xlane.f32.xlu1 %v2665_v24 }
 0x68b   :  { %v2619_v25 = vpop.xlane.xlu0 %2618 }
 0x68c   :  { %v2623_v26 = vmul.f32 0.03125, %v2619_v25  ;;  %v7997_v25 = vrot.slane %v50_v15, %v87_v33  ;;  %v2735_v33 = vld [vmem:[%s8709_s7 + $0x50] sm:$0xff] }
 0x68e   :  { %v7913_v27 = vsub.f32 %v7882_v60, %v2623_v26 }
 0x68f   :  { %v2658_v29 = vpop.xlane.xlu0 %2657 }
 0x690   :  { %v2669_v31 = vmul.f32 0.020833334, %v2658_v29  ;;  %v2627_v34 = vmul.f32 %v7913_v27, %v7913_v27  ;;  %v2736_v29 = vld [vmem:[%s8709_s7 + $0x58] sm:$0xff] }
 0x692   :  { %v7917_v35 = vsub.f32 %v44_v61, %v2669_v31  ;;  %v2629_v36 = vsel %vm51_vm0, %v2627_v34, 0.0  ;;  %v2739_v31 = vld [vmem:[%s8709_s7 + $0x70] sm:$0xff] }
 0x693   :  { %2630 = vadd.xlane.f32.xlu0 %v2629_v36  ;;  %v2661_v37 = vpop.xlane.xlu0 %2660  ;;  %v2738_v36 = vld [vmem:[%s8709_s7 + $0x68] sm:$0xff] }
 0x694   :  { %v2677_v38 = vmul.f32 %v7917_v35, %v7917_v35  ;;  %v2670_v51 = vmul.f32 0.020833334, %v2661_v37 }
 0x696   :  { %v2681_v14 = vsel %vm2655_vm4, %v2677_v38, 0.0  ;;  %v7961_v18 = vsub.f32 %v7893_v32, %v2670_v51  ;;  %v2733_v38 = vld [vmem:[%s8709_s7 + $0x40] sm:$0xff] }
 0x697   :  { %2682 = vadd.xlane.f32.xlu0 %v2681_v14  ;;  %v2664_v39 = vpop.xlane.xlu0 %2663 }
 0x698   :  { %v2671_v13 = vmul.f32 0.020833334, %v2664_v39  ;;  %v2678_v57 = vmul.f32 %v7961_v18, %v7961_v18  ;;  %v2737_v39 = vld [vmem:[%s8709_s7 + $0x60] sm:$0xff] }
 0x69a   :  { %v7923_v40 = vsub.f32 %v46_v1, %v2671_v13  ;;  %v2684_v61 = vsel %vm2655_vm4, %v2678_v57, 0.0 }
 0x69c   :  { %v2679_v41 = vmul.f32 %v7923_v40, %v7923_v40 }
 0x69e   :  { %v2687_v42 = vsel %vm2655_vm4, %v2679_v41, 0.0  ;;  %v2744_v41 = vld [vmem:[%s8709_s7 + $0x98] sm:$0xff] }
 0x69f   :  { %2688 = vadd.xlane.f32.xlu0 %v2687_v42  ;;  %v2748_v42 = vld [vmem:[%s8709_s7 + $0xb8] sm:$0xff] }
 0x6c4   :  { %v2622_v52 = vpop.xlane.xlu1 %2621 }
 0x6c5   :  { %v2624_v19 = vmul.f32 0.03125, %v2622_v52 }
 0x6c7   :  { %v7964_v53 = vsub.f32 %v7904_v21, %v2624_v19 }
 0x6c8   :  { %v2667_v54 = vpop.xlane.xlu1 %2666 }
 0x6c9   :  { %v2628_v55 = vmul.f32 %v7964_v53, %v7964_v53  ;;  %v2672_v56 = vmul.f32 0.020833334, %v2667_v54 }
 0x6cb   :  { %v2632_v58 = vsel %vm51_vm0, %v2628_v55, 0.0  ;;  %v7971_v59 = vsub.f32 %v47_v22, %v2672_v56  ;;  %v7992_v22 = vrot.slane %v50_v15, %v81_v30  ;;  %v3328_v15 = vld [vmem:[%s8710_s8 + $0x28] sm:$0xff] }
 0x6cc   :  { %2633 = vadd.xlane.f32.xlu1 %v2632_v58 }
 0x6cd   :  { %v2680_v62 = vmul.f32 %v7971_v59, %v7971_v59 }
 0x6cf   :  { %v2690_v63 = vsel %vm2655_vm4, %v2680_v62, 0.0 }
 0x6d0   :  { %2685 = vadd.xlane.f32.xlu1 %v2684_v61 }
 0x6d4   :  { %2691 = vadd.xlane.f32.xlu1 %v2690_v63 }
 0x71c   :  { %v2631_v32 = vpop.xlane.xlu0 %2630 }
 0x71d   :  { %v2635_v0 = vmul.f32 0.03125, %v2631_v32 }
 0x71f   :  { %v2637_v1 = vadd.f32 1e-06, %v2635_v0 }
 0x720   :  { %v2683_v2 = vpop.xlane.xlu0 %2682 }
 0x721   :  { %7282 = vrsqrt.f32 %v2637_v1  ;;  %v2693_v3 = vmul.f32 0.020833334, %v2683_v2  ;;  %v2752_v2 = vld [vmem:[%s8709_s7 + $0xd8] sm:$0xff] }
 0x723   :  { %v2697_v4 = vadd.f32 1e-06, %v2693_v3  ;;  %v2756_v3 = vld [vmem:[%s8709_s7 + $0xf8] sm:$0xff] }
 0x725   :  { %7284 = vrsqrt.f32 %v2697_v4 }
 0x728   :  { %v2689_v5 = vpop.xlane.xlu0 %2688 }
 0x729   :  { %v2695_v6 = vmul.f32 0.020833334, %v2689_v5 }
 0x72b   :  { %v2699_v8 = vadd.f32 1e-06, %v2695_v6 }
 0x72d   :  { %7286 = vrsqrt.f32 %v2699_v8  ;;  %v2754_v8 = vld [vmem:[%s8709_s7 + $0xe8] sm:$0xff] }
 0x72e   :  { %v7283_v12 = vpop.eup %7282 }
 0x72f   :  { %v2641_v17 = vmul.f32 %v7283_v12, %v7913_v27  ;;  %v2740_v27 = vld [vmem:[%s8709_s7 + $0x78] sm:$0xff] }
 0x731   :  { %v2647_v23 = vmul.f32 %v7982_v11, %v2641_v17  ;;  %v3334_v17 = vld [vmem:[%s8710_s8 + $0x58] sm:$0xff] }
 0x732   :  { %v7285_v24 = vpop.eup %7284 }
 0x733   :  { %v2653_v26 = vadd.f32 %v7988_v20, %v2647_v23  ;;  %v2705_v30 = vmul.f32 %v7285_v24, %v7917_v35  ;;  %v2734_v35 = vld [vmem:[%s8709_s7 + $0x48] sm:$0xff]  ;;  %v3326_v23 = vld [vmem:[%s8710_s8 + $0x18] sm:$0xff] }
 0x734   :  { %v3332_v24 = vld [vmem:[%s8710_s8 + $0x48] sm:$0xff] }
 0x735   :  { %6842 = vmatmul.mubr.msk.f32.vlgmr.msra.gmra.mxu0 %vm51_vm0, %v2653_v26  ;;  %6853 = vmatmul.mubr.msk.f32.vlgmr.msra.gmra.mxu1 %vm51_vm0, %v2653_v26  ;;  %v2713_v34 = vmul.f32 %v7992_v22, %v2705_v30  ;;  %v3323_v30 = vld [vmem:[%s8710_s8] sm:$0xff] }
 0x736   :  { %6856 = vmatpush3.msra.mxu0 %v2736_v29  ;;  %6867 = vmatpush3.msra.mxu1 %v2740_v27  ;;  %v3324_v29 = vld [vmem:[%s8710_s8 + $0x8] sm:$0xff]  ;;  %v3330_v27 = vld [vmem:[%s8710_s8 + $0x38] sm:$0xff] }
 0x737   :  { %6857 = vmatprep.subr.mxu0 %v7359_v16  ;;  %6868 = vmatprep.subr.mxu1 %v7359_v16  ;;  %v8025_v37 = vadd.f32 %v7997_v25, %v2713_v34  ;;  %v3346_v34 = vld [vmem:[%s8710_s8 + $0xb8] sm:$0xff] }
 0x738   :  { %6858 = vmatpush3.msra.mxu0 %v2735_v33  ;;  %6869 = vmatpush3.msra.mxu1 %v2739_v31  ;;  %v3329_v33 = vld [vmem:[%s8710_s8 + $0x30] sm:$0xff]  ;;  %v3340_v31 = vld [vmem:[%s8710_s8 + $0x88] sm:$0xff] }
 0x739   :  { %6859 = vmatprep.subr.mxu0 %v7359_v16  ;;  %6870 = vmatprep.subr.mxu1 %v7359_v16 }
 0x73a   :  { %v7287_v14 = vpop.eup %7286  ;;  %6860 = vmatpush3.msra.mxu0 %v2734_v35  ;;  %6871 = vmatpush3.msra.mxu1 %v2738_v36  ;;  %v3339_v35 = vld [vmem:[%s8710_s8 + $0x80] sm:$0xff]  ;;  %v3345_v36 = vld [vmem:[%s8710_s8 + $0xb0] sm:$0xff] }
 0x73b   :  { %6861 = vmatprep.subr.mxu0 %v7359_v16  ;;  %6872 = vmatprep.subr.mxu1 %v7359_v16  ;;  %v2707_v13 = vmul.f32 %v7287_v14, %v7923_v40  ;;  %v2743_v40 = vld [vmem:[%s8709_s7 + $0x90] sm:$0xff]  ;;  %v3344_v14 = vld [vmem:[%s8710_s8 + $0xa8] sm:$0xff] }
 0x73c   :  { %6862 = vmatpush3.msra.mxu0 %v2733_v38  ;;  %6863 = vmatprep.mubr.msk.f32.mxu0 %vm7360_vm1, %v7359_v16  ;;  %v3338_v38 = vld [vmem:[%s8710_s8 + $0x78] sm:$0xff] }
 0x73d   :  { %6873 = vmatpush3.msra.mxu1 %v2737_v39  ;;  %6874 = vmatprep.mubr.msk.f32.mxu1 %vm7360_vm1, %v7359_v16  ;;  %v2715_v43 = vmul.f32 %v7992_v22, %v2707_v13  ;;  %v3337_v39 = vld [vmem:[%s8710_s8 + $0x70] sm:$0xff]  ;;  %v3336_v13 = vld [vmem:[%s8710_s8 + $0x68] sm:$0xff] }
 0x73e   :  { %6864 = vmatmul.mubr.msk.f32.vlgmr.msra.gmra.mxu0 %vm51_vm0, %v2653_v26  ;;  %6875 = vmatmul.mubr.msk.f32.vlgmr.msra.gmra.mxu1 %vm51_vm0, %v2653_v26  ;;  %v3331_v26 = vld [vmem:[%s8710_s8 + $0x40] sm:$0xff] }
 0x73f   :  { %6877 = vmatprep.subr.mxu0 %v7359_v16  ;;  %6888 = vmatprep.subr.mxu1 %v7359_v16  ;;  %v8060_v45 = vadd.f32 %v7997_v25, %v2715_v43  ;;  %v3341_v43 = vld [vmem:[%s8710_s8 + $0x90] sm:$0xff] }
 0x740   :  { %6878 = vmatpush3.msra.mxu0 %v2744_v41  ;;  %6889 = vmatpush3.msra.mxu1 %v2748_v42  ;;  %v3342_v41 = vld [vmem:[%s8710_s8 + $0x98] sm:$0xff]  ;;  %v3335_v42 = vld [vmem:[%s8710_s8 + $0x60] sm:$0xff] }
 0x741   :  { %6879 = vmatprep.subr.mxu0 %v7359_v16  ;;  %6890 = vmatprep.subr.mxu1 %v7359_v16 }
 0x742   :  { %6880 = vmatpush3.msra.mxu0 %v2743_v40  ;;  %6891 = vmatpush3.msra.mxu1 %v2747_v44  ;;  %v3352_v40 = vld [vmem:[%s8710_s8 + $0xe8] sm:$0xff]  ;;  %v3358_v44 = vld [vmem:[%s8710_s8 + $0x118] sm:$0xff] }
 0x743   :  { %6881 = vmatprep.subr.mxu0 %v7359_v16  ;;  %6892 = vmatprep.subr.mxu1 %v7359_v16 }
 0x744   :  { %6882 = vmatpush3.msra.mxu0 %v2742_v46  ;;  %6893 = vmatpush3.msra.mxu1 %v2746_v47  ;;  %v3351_v46 = vld [vmem:[%s8710_s8 + $0xe0] sm:$0xff]  ;;  %v3357_v47 = vld [vmem:[%s8710_s8 + $0x110] sm:$0xff] }
 0x745   :  { %6883 = vmatprep.subr.mxu0 %v7359_v16  ;;  %6894 = vmatprep.subr.mxu1 %v7359_v16 }
 0x746   :  { %6884 = vmatpush3.msra.mxu0 %v2741_v48  ;;  %6895 = vmatpush3.msra.mxu1 %v2745_v49  ;;  %v3350_v48 = vld [vmem:[%s8710_s8 + $0xd8] sm:$0xff]  ;;  %v3356_v49 = vld [vmem:[%s8710_s8 + $0x108] sm:$0xff] }
 0x747   :  { %6885 = vmatprep.mubr.msk.f32.mxu0 %vm7360_vm1, %v7359_v16  ;;  %6896 = vmatprep.mubr.msk.f32.mxu1 %vm7360_vm1, %v7359_v16 }
 0x748   :  { %6899 = vmatprep.subr.mxu0 %v7359_v16  ;;  %6910 = vmatprep.subr.mxu1 %v7359_v16 }
 0x755   :  { %v2634_v50 = vpop.xlane.xlu1 %2633 }
 0x756   :  { %v2636_v51 = vmul.f32 0.03125, %v2634_v50  ;;  %v3349_v50 = vld [vmem:[%s8710_s8 + $0xd0] sm:$0xff] }
 0x758   :  { %v2638_v52 = vadd.f32 1e-06, %v2636_v51  ;;  %v3355_v51 = vld [vmem:[%s8710_s8 + $0x100] sm:$0xff] }
 0x759   :  { %v2686_v19 = vpop.xlane.xlu1 %2685 }
 0x75a   :  { %7288 = vrsqrt.f32 %v2638_v52  ;;  %v2694_v54 = vmul.f32 0.020833334, %v2686_v19  ;;  %v3348_v52 = vld [vmem:[%s8710_s8 + $0xc8] sm:$0xff]  ;;  %v3354_v19 = vld [vmem:[%s8710_s8 + $0xf8] sm:$0xff] }
 0x75c   :  { %v2698_v55 = vadd.f32 1e-06, %v2694_v54  ;;  %v3347_v54 = vld [vmem:[%s8710_s8 + $0xc0] sm:$0xff] }
 0x75d   :  { %v2692_v56 = vpop.xlane.xlu1 %2691 }
 0x75e   :  { %7290 = vrsqrt.f32 %v2698_v55  ;;  %v2696_v57 = vmul.f32 0.020833334, %v2692_v56  ;;  %v3353_v55 = vld [vmem:[%s8710_s8 + $0xf0] sm:$0xff]  ;;  %v3364_v56 = vld [vmem:[%s8710_s8 + $0x148] sm:$0xff] }
 0x760   :  { %v2700_v58 = vadd.f32 1e-06, %v2696_v57  ;;  %v3370_v57 = vld [vmem:[%s8710_s8 + $0x178] sm:$0xff] }
 0x762   :  { %7292 = vrsqrt.f32 %v2700_v58  ;;  %v3363_v58 = vld [vmem:[%s8710_s8 + $0x140] sm:$0xff] }
 0x767   :  { %v7289_v61 = vpop.eup %7288 }
 0x768   :  { %v2642_v62 = vmul.f32 %v7289_v61, %v7964_v53  ;;  %v2751_v53 = vld [vmem:[%s8709_s7 + $0xd0] sm:$0xff] }
 0x769   :  { %v3369_v61 = vld [vmem:[%s8710_s8 + $0x170] sm:$0xff] }
 0x76a   :  { %v2648_v63 = vmul.f32 %v7982_v11, %v2642_v62  ;;  %v2753_v11 = vld [vmem:[%s8709_s7 + $0xe0] sm:$0xff]  ;;  %v3362_v62 = vld [vmem:[%s8710_s8 + $0x138] sm:$0xff] }
 0x76b   :  { %v7291_v32 = vpop.eup %7290 }
 0x76c   :  { %v2706_v0 = vmul.f32 %v7291_v32, %v7961_v18  ;;  %v2654_v1 = vadd.f32 %v7988_v20, %v2648_v63  ;;  %v2755_v18 = vld [vmem:[%s8709_s7 + $0xf0] sm:$0xff]  ;;  %v3327_v20 = vld [vmem:[%s8710_s8 + $0x20] sm:$0xff]  ;;  %v3368_v63 = vld [vmem:[%s8710_s8 + $0x168] sm:$0xff] }
 0x76d   :  { %v3361_v32 = vld [vmem:[%s8710_s8 + $0x130] sm:$0xff] }
 0x76e   :  { %6886 = vmatmul.mubr.msk.f32.vlgmr.msra.gmra.mxu0 %vm51_vm0, %v2654_v1  ;;  %6897 = vmatmul.mubr.msk.f32.vlgmr.msra.gmra.mxu1 %vm51_vm0, %v2654_v1  ;;  %v2714_v4 = vmul.f32 %v7992_v22, %v2706_v0  ;;  %v3360_v0 = vld [vmem:[%s8710_s8 + $0x128] sm:$0xff] }
 0x76f   :  { %v7293_v5 = vpop.eup %7292  ;;  %6900 = vmatpush3.msra.mxu0 %v2752_v2  ;;  %6911 = vmatpush3.msra.mxu1 %v2756_v3  ;;  %v3359_v2 = vld [vmem:[%s8710_s8 + $0x120] sm:$0xff]  ;;  %v3365_v3 = vld [vmem:[%s8710_s8 + $0x150] sm:$0xff] }
 0x770   :  { %v2708_v6 = vmul.f32 %v7293_v5, %v7971_v59  ;;  %6901 = vmatprep.subr.mxu0 %v7359_v16  ;;  %6912 = vmatprep.subr.mxu1 %v7359_v16  ;;  %v8115_v9 = vadd.f32 %v7997_v25, %v2714_v4  ;;  %v2749_v59 = vld [vmem:[%s8709_s7 + $0xc0] sm:$0xff] }
 0x771   :  { %6902 = vmatpush3.msra.mxu0 %v2751_v53  ;;  %6913 = vmatpush3.msra.mxu1 %v2755_v18 }
 0x772   :  { %6903 = vmatprep.subr.mxu0 %v7359_v16  ;;  %6914 = vmatprep.subr.mxu1 %v7359_v16  ;;  %v2716_v10 = vmul.f32 %v7992_v22, %v2708_v6  ;;  %v3333_v22 = vld [vmem:[%s8710_s8 + $0x50] sm:$0xff] }
 0x773   :  { %6904 = vmatpush3.msra.mxu0 %v2750_v7  ;;  %6915 = vmatpush3.msra.mxu1 %v2754_v8 }
 0x774   :  { %6905 = vmatprep.subr.mxu0 %v7359_v16  ;;  %6916 = vmatprep.subr.mxu1 %v7359_v16  ;;  %v8129_v12 = vadd.f32 %v7997_v25, %v2716_v10  ;;  %v3325_v25 = vld [vmem:[%s8710_s8 + $0x10] sm:$0xff] }
 0x775   :  { %6906 = vmatpush3.msra.mxu0 %v2749_v59  ;;  %6907 = vmatprep.mubr.msk.f32.mxu0 %vm7360_vm1, %v7359_v16 }
 0x776   :  { %6917 = vmatpush3.msra.mxu1 %v2753_v11  ;;  %6918 = vmatprep.mubr.msk.f32.mxu1 %vm7360_vm1, %v7359_v16 }
 0x777   :  { %6908 = vmatmul.mubr.msk.f32.vlgmr.msra.gmra.mxu0 %vm51_vm0, %v2654_v1  ;;  %6919 = vmatmul.mubr.msk.f32.vlgmr.msra.gmra.mxu1 %vm51_vm0, %v2654_v1  ;;  %v3366_v1 = vld [vmem:[%s8710_s8 + $0x158] sm:$0xff] }
 0x778   :  { %6921 = vmatprep.subr.mxu0 %v3328_v15  ;;  %6936 = vmatprep.subr.mxu1 %v3334_v17 }
 0x779   :  { %6922 = vmatpush3.msra.mxu0 %v3328_v15  ;;  %6933 = vmatprep.mubr.msk.f32.mxu0 %vm2655_vm4, %v8025_v37 }
 0x77a   :  { %6937 = vmatpush3.msra.mxu1 %v3334_v17  ;;  %6948 = vmatprep.mubr.msk.f32.mxu1 %vm2655_vm4, %v8025_v37 }
 0x77b   :  { %6923 = vmatprep.subr.mxu0 %v3327_v20  ;;  %6938 = vmatprep.subr.mxu1 %v3333_v22 }
 0x77c   :  { %6924 = vmatpush3.msra.mxu0 %v3327_v20  ;;  %6939 = vmatpush3.msra.mxu1 %v3333_v22 }
 0x77d   :  { %6925 = vmatprep.subr.mxu0 %v3326_v23  ;;  %6940 = vmatprep.subr.mxu1 %v3332_v24 }
 0x77e   :  { %6926 = vmatpush3.msra.mxu0 %v3326_v23  ;;  %6941 = vmatpush3.msra.mxu1 %v3332_v24 }
 0x77f   :  { %6927 = vmatprep.subr.mxu0 %v3325_v25  ;;  %6942 = vmatprep.subr.mxu1 %v3331_v26 }
 0x780   :  { %6928 = vmatpush3.msra.mxu0 %v3325_v25  ;;  %6943 = vmatpush3.msra.mxu1 %v3331_v26 }
 0x781   :  { %6929 = vmatprep.subr.mxu0 %v3324_v29  ;;  %6944 = vmatprep.subr.mxu1 %v3330_v27 }
 0x782   :  { %6930 = vmatpush3.msra.mxu0 %v3324_v29  ;;  %6945 = vmatpush3.msra.mxu1 %v3330_v27 }
 0x783   :  { %6931 = vmatprep.subr.mxu0 %v3323_v30  ;;  %6946 = vmatprep.subr.mxu1 %v3329_v33 }
 0x784   :  { %6932 = vmatpush3.msra.mxu0 %v3323_v30  ;;  %6947 = vmatpush3.msra.mxu1 %v3329_v33 }
 0x785   :  { %6934 = vmatmul.mubr.msk.f32.vlgmr.msra.gmra.mxu0 %vm2655_vm4, %v8115_v9  ;;  %6949 = vmatmul.mubr.msk.f32.vlgmr.msra.gmra.mxu1 %vm2655_vm4, %v8115_v9 }
 0x786   :  { %6951 = vmatprep.subr.mxu0 %v3340_v31  ;;  %6966 = vmatprep.subr.mxu1 %v3346_v34 }
 0x787   :  { %6952 = vmatpush3.msra.mxu0 %v3340_v31  ;;  %6963 = vmatprep.mubr.msk.f32.mxu0 %vm2655_vm4, %v8025_v37 }
 0x788   :  { %6967 = vmatpush3.msra.mxu1 %v3346_v34  ;;  %6978 = vmatprep.mubr.msk.f32.mxu1 %vm2655_vm4, %v8025_v37  ;;  %v3343_v37 = vld [vmem:[%s8710_s8 + $0xa0] sm:$0xff] }
 0x789   :  { %6953 = vmatprep.subr.mxu0 %v3339_v35  ;;  %6968 = vmatprep.subr.mxu1 %v3345_v36 }
 0x78a   :  { %6954 = vmatpush3.msra.mxu0 %v3339_v35  ;;  %6969 = vmatpush3.msra.mxu1 %v3345_v36 }
 0x78b   :  { %6955 = vmatprep.subr.mxu0 %v3338_v38  ;;  %6970 = vmatprep.subr.mxu1 %v3344_v14 }
 0x78c   :  { %6956 = vmatpush3.msra.mxu0 %v3338_v38  ;;  %6971 = vmatpush3.msra.mxu1 %v3344_v14 }
 0x78d   :  { %6957 = vmatprep.subr.mxu0 %v3337_v39  ;;  %6972 = vmatprep.subr.mxu1 %v3343_v37 }
 0x78e   :  { %6958 = vmatpush3.msra.mxu0 %v3337_v39  ;;  %6973 = vmatpush3.msra.mxu1 %v3343_v37 }
 0x78f   :  { %6959 = vmatprep.subr.mxu0 %v3336_v13  ;;  %6974 = vmatprep.subr.mxu1 %v3342_v41 }
 0x790   :  { %6960 = vmatpush3.msra.mxu0 %v3336_v13  ;;  %6975 = vmatpush3.msra.mxu1 %v3342_v41 }
 0x791   :  { %6961 = vmatprep.subr.mxu0 %v3335_v42  ;;  %6976 = vmatprep.subr.mxu1 %v3341_v43 }
 0x792   :  { %6962 = vmatpush3.msra.mxu0 %v3335_v42  ;;  %6977 = vmatpush3.msra.mxu1 %v3341_v43 }
 0x793   :  { %6964 = vmatmul.mubr.msk.f32.vlgmr.msra.gmra.mxu0 %vm2655_vm4, %v8115_v9  ;;  %6979 = vmatmul.mubr.msk.f32.vlgmr.msra.gmra.mxu1 %vm2655_vm4, %v8115_v9 }
 0x794   :  { %6981 = vmatprep.subr.mxu0 %v3352_v40  ;;  %6996 = vmatprep.subr.mxu1 %v3358_v44 }
 0x795   :  { %6982 = vmatpush3.msra.mxu0 %v3352_v40  ;;  %6993 = vmatprep.mubr.msk.f32.mxu0 %vm2655_vm4, %v8060_v45 }
 0x796   :  { %6997 = vmatpush3.msra.mxu1 %v3358_v44  ;;  %7008 = vmatprep.mubr.msk.f32.mxu1 %vm2655_vm4, %v8060_v45 }
 0x797   :  { %6983 = vmatprep.subr.mxu0 %v3351_v46  ;;  %6998 = vmatprep.subr.mxu1 %v3357_v47 }
 0x798   :  { %6984 = vmatpush3.msra.mxu0 %v3351_v46  ;;  %6999 = vmatpush3.msra.mxu1 %v3357_v47 }
 0x799   :  { %6985 = vmatprep.subr.mxu0 %v3350_v48  ;;  %7000 = vmatprep.subr.mxu1 %v3356_v49 }
 0x79a   :  { %6986 = vmatpush3.msra.mxu0 %v3350_v48  ;;  %7001 = vmatpush3.msra.mxu1 %v3356_v49 }
 0x79b   :  { %6987 = vmatprep.subr.mxu0 %v3349_v50  ;;  %7002 = vmatprep.subr.mxu1 %v3355_v51 }
 0x79c   :  { %6988 = vmatpush3.msra.mxu0 %v3349_v50  ;;  %7003 = vmatpush3.msra.mxu1 %v3355_v51 }
 0x79d   :  { %6989 = vmatprep.subr.mxu0 %v3348_v52  ;;  %7004 = vmatprep.subr.mxu1 %v3354_v19 }
 0x79e   :  { %6990 = vmatpush3.msra.mxu0 %v3348_v52  ;;  %7005 = vmatpush3.msra.mxu1 %v3354_v19 }
 0x79f   :  { %6991 = vmatprep.subr.mxu0 %v3347_v54  ;;  %7006 = vmatprep.subr.mxu1 %v3353_v55 }
 0x7a0   :  { %6992 = vmatpush3.msra.mxu0 %v3347_v54  ;;  %7007 = vmatpush3.msra.mxu1 %v3353_v55 }
 0x7a1   :  { %6994 = vmatmul.mubr.msk.f32.vlgmr.msra.gmra.mxu0 %vm2655_vm4, %v8129_v12  ;;  %7009 = vmatmul.mubr.msk.f32.vlgmr.msra.gmra.mxu1 %vm2655_vm4, %v8129_v12 }
 0x7a2   :  { %7011 = vmatprep.subr.mxu0 %v3364_v56  ;;  %7026 = vmatprep.subr.mxu1 %v3370_v57 }
 0x7a3   :  { %7012 = vmatpush3.msra.mxu0 %v3364_v56  ;;  %7023 = vmatprep.mubr.msk.f32.mxu0 %vm2655_vm4, %v8060_v45 }
 0x7a4   :  { %7027 = vmatpush3.msra.mxu1 %v3370_v57  ;;  %7038 = vmatprep.mubr.msk.f32.mxu1 %vm2655_vm4, %v8060_v45  ;;  %v3367_v45 = vld [vmem:[%s8710_s8 + $0x160] sm:$0xff] }
 0x7a5   :  { %7013 = vmatprep.subr.mxu0 %v3363_v58  ;;  %7028 = vmatprep.subr.mxu1 %v3369_v61 }
 0x7a6   :  { %7014 = vmatpush3.msra.mxu0 %v3363_v58  ;;  %7029 = vmatpush3.msra.mxu1 %v3369_v61 }
 0x7a7   :  { %7015 = vmatprep.subr.mxu0 %v3362_v62  ;;  %7030 = vmatprep.subr.mxu1 %v3368_v63 }
 0x7a8   :  { %7016 = vmatpush3.msra.mxu0 %v3362_v62  ;;  %7031 = vmatpush3.msra.mxu1 %v3368_v63 }
 0x7a9   :  { %7017 = vmatprep.subr.mxu0 %v3361_v32  ;;  %7032 = vmatprep.subr.mxu1 %v3367_v45 }
 0x7aa   :  { %7018 = vmatpush3.msra.mxu0 %v3361_v32  ;;  %7033 = vmatpush3.msra.mxu1 %v3367_v45 }
 0x7ab   :  { %7019 = vmatprep.subr.mxu0 %v3360_v0  ;;  %7034 = vmatprep.subr.mxu1 %v3366_v1 }
 0x7ac   :  { %7020 = vmatpush3.msra.mxu0 %v3360_v0  ;;  %7035 = vmatpush3.msra.mxu1 %v3366_v1 }
 0x7ad   :  { %7021 = vmatprep.subr.mxu0 %v3359_v2  ;;  %7036 = vmatprep.subr.mxu1 %v3365_v3 }
 0x7ae   :  { %7022 = vmatpush3.msra.mxu0 %v3359_v2  ;;  %7037 = vmatpush3.msra.mxu1 %v3365_v3 }
 0x7af   :  { %7024 = vmatmul.mubr.msk.f32.vlgmr.msra.gmra.mxu0 %vm2655_vm4, %v8129_v12  ;;  %7039 = vmatmul.mubr.msk.f32.vlgmr.msra.gmra.mxu1 %vm2655_vm4, %v8129_v12 }
 0x7b0   :  { %7041 = vmatprep.subr.mxu0 %v7359_v16  ;;  %7048 = vmatprep.subr.mxu1 %v7359_v16 }
 0x7b1   :  { %7045 = vmatprep.mubr.msk.f32.mxu0 %vm7360_vm1, %v7359_v16  ;;  %7052 = vmatprep.mubr.msk.f32.mxu1 %vm7360_vm1, %v7359_v16 }
 0x7f5   :  { %v2826_v53 = vpop.f32.mrf.mxu0  ;;  %v2896_v18 = vpop.f32.mrf.mxu1 }
 0x7f7   :  { %v6843_v4 = vpop.f32.mrf.mxu0  ;;  %v6854_v5 = vpop.f32.mrf.mxu1 }
 0x7fe   :  { %v2966_v6 = vpop.f32.mrf.mxu0  ;;  %v3036_v7 = vpop.f32.mrf.mxu1 }
 0x800   :  { %v6865_v8 = vpop.f32.mrf.mxu0  ;;  %v6876_v9 = vpop.f32.mrf.mxu1 }
 0x82e   :  { %v3109_v59 = vpop.f32.mrf.mxu0  ;;  %v3179_v10 = vpop.f32.mrf.mxu1 }
 0x830   :  { %v6887_v11 = vpop.f32.mrf.mxu0  ;;  %v6898_v12 = vpop.f32.mrf.mxu1 }
 0x837   :  { %v8319_v15 = vpop.f32.mrf.mxu0  ;;  %v8321_v17 = vpop.f32.mrf.mxu1 }
 0x839   :  { %v6909_v20 = vpop.f32.mrf.mxu0  ;;  %v6920_v22 = vpop.f32.mrf.mxu1 }
 0x845   :  { %v8323_v23 = vpop.f32.mrf.mxu0  ;;  %v8325_v24 = vpop.f32.mrf.mxu1 }
 0x846   :  { %7042 = vmatpush3.xpose.msk.msra.mxu0 %vm708_vm2, %v8323_v23  ;;  %7049 = vmatpush3.xpose.msk.msra.mxu1 %vm708_vm2, %v8325_v24 }
 0x847   :  { %7043 = vmatprep.subr.mxu0 %v7359_v16  ;;  %7050 = vmatprep.subr.mxu1 %v7359_v16  ;;  %v8333_v25 = vpop.f32.mrf.mxu0  ;;  %v8335_v26 = vpop.f32.mrf.mxu1 }
 0x84a   :  { %7044 = vmatpush3.xpose.msk.msra.mxu0 %vm708_vm2, %v8333_v25  ;;  %7051 = vmatpush3.xpose.msk.msra.mxu1 %vm708_vm2, %v8335_v26 }
 0x84b   :  { %7055 = vmatprep.subr.mxu0 %v7359_v16  ;;  %7062 = vmatprep.subr.mxu1 %v7359_v16 }
 0x84d   :  { %7046 = vmatmul.mubr.msk.f32.vlgmr.msra.gmra.mxu0 %vm708_vm2, %v2826_v53  ;;  %7053 = vmatmul.mubr.msk.f32.vlgmr.msra.gmra.mxu1 %vm708_vm2, %v2896_v18 }
 0x84e   :  { %7059 = vmatprep.mubr.msk.f32.mxu0 %vm7360_vm1, %v7359_v16  ;;  %7066 = vmatprep.mubr.msk.f32.mxu1 %vm7360_vm1, %v7359_v16 }
 0x853   :  { %v8349_v29 = vpop.f32.mrf.mxu0  ;;  %v8351_v27 = vpop.f32.mrf.mxu1 }
 0x854   :  { %7056 = vmatpush3.xpose.msk.msra.mxu0 %vm708_vm2, %v8349_v29  ;;  %7063 = vmatpush3.xpose.msk.msra.mxu1 %vm708_vm2, %v8351_v27 }
 0x855   :  { %7057 = vmatprep.subr.mxu0 %v7359_v16  ;;  %7064 = vmatprep.subr.mxu1 %v7359_v16  ;;  %v8359_v30 = vpop.f32.mrf.mxu0  ;;  %v8361_v33 = vpop.f32.mrf.mxu1 }
 0x858   :  { %7058 = vmatpush3.xpose.msk.msra.mxu0 %vm708_vm2, %v8359_v30  ;;  %7065 = vmatpush3.xpose.msk.msra.mxu1 %vm708_vm2, %v8361_v33 }
 0x859   :  { %7069 = vmatprep.subr.mxu0 %v7359_v16  ;;  %7076 = vmatprep.subr.mxu1 %v7359_v16 }
 0x85b   :  { %7060 = vmatmul.mubr.msk.f32.vlgmr.msra.gmra.mxu0 %vm708_vm2, %v2966_v6  ;;  %7067 = vmatmul.mubr.msk.f32.vlgmr.msra.gmra.mxu1 %vm708_vm2, %v3036_v7 }
 0x85c   :  { %7073 = vmatprep.mubr.msk.f32.mxu0 %vm7360_vm1, %v7359_v16  ;;  %7080 = vmatprep.mubr.msk.f32.mxu1 %vm7360_vm1, %v7359_v16 }
 0x861   :  { %v8375_v31 = vpop.f32.mrf.mxu0  ;;  %v8377_v34 = vpop.f32.mrf.mxu1 }
 0x862   :  { %7070 = vmatpush3.xpose.msk.msra.mxu0 %vm708_vm2, %v8375_v31  ;;  %7077 = vmatpush3.xpose.msk.msra.mxu1 %vm708_vm2, %v8377_v34 }
 0x863   :  { %7071 = vmatprep.subr.mxu0 %v7359_v16  ;;  %7078 = vmatprep.subr.mxu1 %v7359_v16  ;;  %v8385_v35 = vpop.f32.mrf.mxu0  ;;  %v8387_v36 = vpop.f32.mrf.mxu1 }
 0x866   :  { %7072 = vmatpush3.xpose.msk.msra.mxu0 %vm708_vm2, %v8385_v35  ;;  %7079 = vmatpush3.xpose.msk.msra.mxu1 %vm708_vm2, %v8387_v36 }
 0x867   :  { %7083 = vmatprep.subr.mxu0 %v7359_v16  ;;  %7090 = vmatprep.subr.mxu1 %v7359_v16 }
 0x869   :  { %7074 = vmatmul.mubr.msk.f32.vlgmr.msra.gmra.mxu0 %vm708_vm2, %v3109_v59  ;;  %7081 = vmatmul.mubr.msk.f32.vlgmr.msra.gmra.mxu1 %vm708_vm2, %v3179_v10 }
 0x86a   :  { %7087 = vmatprep.mubr.msk.f32.mxu0 %vm7360_vm1, %v7359_v16  ;;  %7094 = vmatprep.mubr.msk.f32.mxu1 %vm7360_vm1, %v7359_v16 }
 0x86f   :  { %v7025_v38 = vpop.f32.mrf.mxu0  ;;  %v8401_v14 = vpop.f32.mrf.mxu1 }
 0x870   :  { %7084 = vmatpush3.xpose.msk.msra.mxu0 %vm708_vm2, %v7025_v38  ;;  %7091 = vmatpush3.xpose.msk.msra.mxu1 %vm708_vm2, %v8401_v14 }
 0x871   :  { %7085 = vmatprep.subr.mxu0 %v7359_v16  ;;  %7092 = vmatprep.subr.mxu1 %v7359_v16  ;;  %v3899_v39 = vpop.f32.mrf.mxu0  ;;  %v8408_v37 = vpop.f32.mrf.mxu1 }
 0x874   :  { %7086 = vmatpush3.xpose.msk.msra.mxu0 %vm708_vm2, %v3899_v39  ;;  %7093 = vmatpush3.xpose.msk.msra.mxu1 %vm708_vm2, %v8408_v37 }
 0x875   :  { %7104 = vmatprep.subr.mxu1 %v7359_v16  ;;  %7097 = vmatprep.subr.mxu0 %v7359_v16 }
 0x877   :  { %7088 = vmatmul.mubr.msk.f32.vlgmr.msra.gmra.mxu0 %vm708_vm2, %v8319_v15  ;;  %7095 = vmatmul.mubr.msk.f32.vlgmr.msra.gmra.mxu1 %vm708_vm2, %v8321_v17 }
 0x878   :  { %7101 = vmatprep.mubr.msk.f32.mxu0 %vm7360_vm1, %v7359_v16  ;;  %7108 = vmatprep.mubr.msk.f32.mxu1 %vm7360_vm1, %v7359_v16 }
 0x90d   :  { %v4074_v13 = vpop.f32.mrf.mxu0  ;;  %v4153_v41 = vpop.f32.mrf.mxu1 }
 0x90e   :  { %v4634_v42 = vsel %vm708_vm2, %v4153_v41, -inf  ;;  %v4631_v43 = vsel %vm708_vm2, %v4074_v13, -inf }
 0x90f   :  { %4635 = vmax.xlane.f32.xlu1 %v4634_v42  ;;  %v7054_v40 = vpop.f32.mrf.mxu1  ;;  %4632 = vmax.xlane.f32.xlu0 %v4631_v43  ;;  %v7047_v44 = vpop.f32.mrf.mxu0 }
 0x91b   :  { %v4232_v46 = vpop.f32.mrf.mxu0  ;;  %v4311_v47 = vpop.f32.mrf.mxu1 }
 0x91c   :  { %v4640_v48 = vsel %vm708_vm2, %v4311_v47, -inf  ;;  %v4637_v49 = vsel %vm708_vm2, %v4232_v46, -inf }
 0x91d   :  { %4641 = vmax.xlane.f32.xlu1 %v4640_v48  ;;  %v7068_v50 = vpop.f32.mrf.mxu1  ;;  %4638 = vmax.xlane.f32.xlu0 %v4637_v49  ;;  %v7061_v51 = vpop.f32.mrf.mxu0 }
 0x929   :  { %v4390_v52 = vpop.f32.mrf.mxu0  ;;  %v4469_v19 = vpop.f32.mrf.mxu1 }
 0x92a   :  { %v4646_v54 = vsel %vm708_vm2, %v4469_v19, -inf  ;;  %v4643_v55 = vsel %vm708_vm2, %v4390_v52, -inf }
 0x92b   :  { %4647 = vmax.xlane.f32.xlu1 %v4646_v54  ;;  %v7082_v56 = vpop.f32.mrf.mxu1  ;;  %4644 = vmax.xlane.f32.xlu0 %v4643_v55  ;;  %v7075_v57 = vpop.f32.mrf.mxu0 }
 0x937   :  { %v8429_v58 = vpop.f32.mrf.mxu0  ;;  %v8431_v61 = vpop.f32.mrf.mxu1 }
 0x938   :  { %v4649_v62 = vsel %vm708_vm2, %v8429_v58, -inf  ;;  %v4652_v45 = vsel %vm708_vm2, %v8431_v61, -inf }
 0x939   :  { %v7096_v63 = vpop.f32.mrf.mxu1  ;;  %4650 = vmax.xlane.f32.xlu0 %v4649_v62  ;;  %v7089_v32 = vpop.f32.mrf.mxu0 }
 0x93c   :  { %4719 = vrot.lane.b32.xlu1 %v8333_v25, %s7361_s5 }
 0x940   :  { %4800 = vrot.lane.b32.xlu1 %v8325_v24, %s7361_s5 }
 0x944   :  { %4798 = vrot.lane.b32.xlu1 %v8335_v26, %s7361_s5 }
 0x94f   :  { %4721 = vrot.lane.b32.xlu0 %v8323_v23, %s7361_s5 }
 0x953   :  { %4879 = vrot.lane.b32.xlu0 %v8349_v29, %s7361_s5 }
 0x957   :  { %4958 = vrot.lane.b32.xlu0 %v8351_v27, %s7361_s5 }
 0x95b   :  { %5037 = vrot.lane.b32.xlu0 %v8375_v31, %s7361_s5 }
 0x95f   :  { %5116 = vrot.lane.b32.xlu0 %v8377_v34, %s7361_s5 }
 0x963   :  { %5195 = vrot.lane.b32.xlu0 %v7025_v38, %s7361_s5 }
 0x968   :  { %4653 = vmax.xlane.f32.xlu1 %v4652_v45 }
 0x979   :  { %4877 = vrot.lane.b32.xlu1 %v8359_v30, %s7361_s5 }
 0x97d   :  { %4956 = vrot.lane.b32.xlu1 %v8361_v33, %s7361_s5 }
 0x981   :  { %5035 = vrot.lane.b32.xlu1 %v8385_v35, %s7361_s5 }
 0x985   :  { %5114 = vrot.lane.b32.xlu1 %v8387_v36, %s7361_s5 }
 0x989   :  { %5193 = vrot.lane.b32.xlu1 %v3899_v39, %s7361_s5 }
 0x998   :  { %v4636_v0 = vpop.xlane.xlu1 %4635  ;;  %v4633_v1 = vpop.xlane.xlu0 %4632 }
 0x999   :  { %v4656_v2 = vsub.f32 %v4153_v41, %v4636_v0  ;;  %v4655_v3 = vsub.f32 %v4074_v13, %v4633_v1 }
 0x99b   :  { %v4665_v53 = vmul.f32 1.442695, %v4656_v2  ;;  %v4663_v18 = vmul.f32 1.442695, %v4655_v3 }
 0x99d   :  { %7294 = vpow2.f32 %v4665_v53 }
 0x99e   :  { %7296 = vpow2.f32 %v4663_v18 }
 0x9a6   :  { %v4642_v4 = vpop.xlane.xlu1 %4641  ;;  %v4639_v5 = vpop.xlane.xlu0 %4638 }
 0x9a7   :  { %v4658_v6 = vsub.f32 %v4311_v47, %v4642_v4  ;;  %v4657_v7 = vsub.f32 %v4232_v46, %v4639_v5 }
 0x9a9   :  { %v4669_v8 = vmul.f32 1.442695, %v4658_v6  ;;  %v4667_v9 = vmul.f32 1.442695, %v4657_v7 }
 0x9aa   :  { %v8463_v59 = vpop.eup %7294 }
 0x9ab   :  { %v8465_v10 = vpop.eup %7296  ;;  %7298 = vpow2.f32 %v4669_v8  ;;  %v4682_v11 = vsel %vm708_vm2, %v8463_v59, 0.0 }
 0x9ac   :  { %7300 = vpow2.f32 %v4667_v9  ;;  %v4679_v12 = vsel %vm708_vm2, %v8465_v10, 0.0 }
 0x9ad   :  { %4683 = vadd.xlane.f32.xlu1 %v4682_v11  ;;  %4680 = vadd.xlane.f32.xlu0 %v4679_v12 }
 0x9b4   :  { %v4648_v15 = vpop.xlane.xlu1 %4647  ;;  %v4645_v17 = vpop.xlane.xlu0 %4644 }
 0x9b5   :  { %v4660_v20 = vsub.f32 %v4469_v19, %v4648_v15  ;;  %v4659_v22 = vsub.f32 %v4390_v52, %v4645_v17  ;;  %v3984_v15 = vld [vmem:[%s8711_s9 + $0x8] sm:$0xff]  ;;  %v3983_v17 = vld [vmem:[%s8711_s9] sm:$0xff] }
 0x9b7   :  { %v4673_v23 = vmul.f32 1.442695, %v4660_v20  ;;  %v4671_v24 = vmul.f32 1.442695, %v4659_v22 }
 0x9b8   :  { %v8471_v25 = vpop.eup %7298  ;;  %v4720_v26 = vpop.permute.xlu1 %4719 }
 0x9b9   :  { %v8473_v29 = vpop.eup %7300  ;;  %7302 = vpow2.f32 %v4673_v23  ;;  %v4688_v27 = vsel %vm708_vm2, %v8471_v25, 0.0 }
 0x9ba   :  { %7304 = vpow2.f32 %v4671_v24  ;;  %4689 = vadd.xlane.f32.xlu1 %v4688_v27  ;;  %v4685_v30 = vsel %vm708_vm2, %v8473_v29, 0.0 }
 0x9bb   :  { %4686 = vadd.xlane.f32.xlu0 %v4685_v30  ;;  %v3988_v30 = vld [vmem:[%s8711_s9 + $0x28] sm:$0xff] }
 0x9bc   :  { %v4801_v33 = vpop.permute.xlu1 %4800 }
 0x9bd   :  { %7105 = vmatpush3.msra.mxu1 %v4801_v33 }
 0x9be   :  { %7106 = vmatprep.subr.mxu1 %v7359_v16 }
 0x9c0   :  { %v4799_v31 = vpop.permute.xlu1 %4798 }
 0x9c1   :  { %7107 = vmatpush3.msra.mxu1 %v4799_v31 }
 0x9c2   :  { %v4651_v34 = vpop.xlane.xlu0 %4650  ;;  %7118 = vmatprep.subr.mxu1 %v7359_v16 }
 0x9c3   :  { %v4661_v35 = vsub.f32 %v8429_v58, %v4651_v34  ;;  %v3987_v34 = vld [vmem:[%s8711_s9 + $0x20] sm:$0xff] }
 0x9c5   :  { %v4675_v36 = vmul.f32 1.442695, %v4661_v35  ;;  %v3989_v35 = vld [vmem:[%s8711_s9 + $0x30] sm:$0xff] }
 0x9c6   :  { %v8482_v38 = vpop.eup %7302  ;;  %v4722_v39 = vpop.permute.xlu0 %4721 }
 0x9c7   :  { %v8484_v13 = vpop.eup %7304  ;;  %7306 = vpow2.f32 %v4675_v36  ;;  %7098 = vmatpush3.msra.mxu0 %v4722_v39  ;;  %v4694_v41 = vsel %vm708_vm2, %v8482_v38, 0.0 }
 0x9c8   :  { %7099 = vmatprep.subr.mxu0 %v7359_v16  ;;  %4695 = vadd.xlane.f32.xlu1 %v4694_v41  ;;  %v4691_v42 = vsel %vm708_vm2, %v8484_v13, 0.0 }
 0x9c9   :  { %7100 = vmatpush3.msra.mxu0 %v4720_v26  ;;  %4692 = vadd.xlane.f32.xlu0 %v4691_v42  ;;  %v3985_v26 = vld [vmem:[%s8711_s9 + $0x10] sm:$0xff] }
 0x9ca   :  { %7111 = vmatprep.subr.mxu0 %v7359_v16  ;;  %v4880_v50 = vpop.permute.xlu0 %4879 }
 0x9ce   :  { %v4959_v52 = vpop.permute.xlu0 %4958 }
 0x9d2   :  { %v5038_v54 = vpop.permute.xlu0 %5037 }
 0x9d4   :  { %v8492_v43 = vpop.eup %7306 }
 0x9d5   :  { %v4697_v40 = vsel %vm708_vm2, %v8492_v43, 0.0 }
 0x9d6   :  { %4698 = vadd.xlane.f32.xlu0 %v4697_v40  ;;  %v5117_v55 = vpop.permute.xlu0 %5116  ;;  %v3993_v40 = vld [vmem:[%s8711_s9 + $0x50] sm:$0xff] }
 0x9da   :  { %v5196_v57 = vpop.permute.xlu0 %5195 }
 0x9ec   :  { %5274 = vrot.lane.b32.xlu0 %v8401_v14, %s7361_s5 }
 0x9f1   :  { %v4654_v44 = vpop.xlane.xlu1 %4653 }
 0x9f2   :  { %v4662_v46 = vsub.f32 %v8431_v61, %v4654_v44 }
 0x9f4   :  { %v4677_v47 = vmul.f32 1.442695, %v4662_v46  ;;  %v3998_v46 = vld [vmem:[%s8711_s9 + $0x78] sm:$0xff] }
 0x9f5   :  { %v4878_v51 = vpop.permute.xlu1 %4877 }
 0x9f6   :  { %7308 = vpow2.f32 %v4677_v47 }
 0x9f9   :  { %v4957_v19 = vpop.permute.xlu1 %4956 }
 0x9fd   :  { %v5036_v14 = vpop.permute.xlu1 %5035 }
 0xa01   :  { %v5115_v56 = vpop.permute.xlu1 %5114 }
 0xa03   :  { %v8499_v48 = vpop.eup %7308 }
 0xa04   :  { %v4700_v49 = vsel %vm708_vm2, %v8499_v48, 0.0 }
 0xa05   :  { %4701 = vadd.xlane.f32.xlu1 %v4700_v49  ;;  %v5194_v58 = vpop.permute.xlu1 %5193 }
 0xa16   :  { %5272 = vrot.lane.b32.xlu1 %v8408_v37, %s7361_s5 }
 0xa36   :  { %v4684_v61 = vpop.xlane.xlu1 %4683  ;;  %v4681_v62 = vpop.xlane.xlu0 %4680 }
 0xa37   :  { %7310 = vrcp.f32 %v4684_v61 }
 0xa38   :  { %7312 = vrcp.f32 %v4681_v62 }
 0xa43   :  { %v4690_v63 = vpop.xlane.xlu1 %4689 }
 0xa44   :  { %v7311_v32 = vpop.eup %7310  ;;  %7314 = vrcp.f32 %v4690_v63  ;;  %v4687_v45 = vpop.xlane.xlu0 %4686  ;;  %v5943_v63 = vsub.s32 7, %v7487_v28 }
 0xa45   :  { %v7313_v0 = vpop.eup %7312  ;;  %7316 = vrcp.f32 %v4687_v45  ;;  %v4712_v37 = vmul.f32 %v7311_v32, %v8463_v59 }
 0xa46   :  { %v4711_v1 = vmul.f32 %v7313_v0, %v8465_v10 }
 0xa47   :  { %7109 = vmatmul.mubr.msk.f32.vlgmr.msra.gmra.mxu1 %vm708_vm2, %v4712_v37 }
 0xa48   :  { %7102 = vmatmul.mubr.msk.f32.vlgmr.msra.gmra.mxu0 %vm708_vm2, %v4711_v1  ;;  %7119 = vmatpush3.msra.mxu1 %v4959_v52  ;;  %v3997_v52 = vld [vmem:[%s8711_s9 + $0x70] sm:$0xff] }
 0xa49   :  { %7112 = vmatpush3.msra.mxu0 %v4880_v50  ;;  %7120 = vmatprep.subr.mxu1 %v7359_v16 }
 0xa4a   :  { %7113 = vmatprep.subr.mxu0 %v7359_v16  ;;  %7121 = vmatpush3.msra.mxu1 %v4957_v19 }
 0xa4b   :  { %7114 = vmatpush3.msra.mxu0 %v4878_v51  ;;  %7115 = vmatprep.mubr.msk.f32.mxu0 %vm7360_vm1, %v7359_v16  ;;  %v3995_v51 = vld [vmem:[%s8711_s9 + $0x60] sm:$0xff] }
 0xa4c   :  { %7122 = vmatprep.mubr.msk.f32.mxu1 %vm7360_vm1, %v7359_v16  ;;  %7125 = vmatprep.subr.mxu0 %v7359_v16 }
 0xa4d   :  { %7132 = vmatprep.subr.mxu1 %v7359_v16 }
 0xa51   :  { %v7315_v2 = vpop.eup %7314  ;;  %v4696_v3 = vpop.xlane.xlu1 %4695 }
 0xa52   :  { %v7317_v53 = vpop.eup %7316  ;;  %7318 = vrcp.f32 %v4696_v3  ;;  %v4693_v18 = vpop.xlane.xlu0 %4692  ;;  %v4714_v4 = vmul.f32 %v7315_v2, %v8471_v25  ;;  %v3986_v25 = vld [vmem:[%s8711_s9 + $0x18] sm:$0xff] }
 0xa53   :  { %7320 = vrcp.f32 %v4693_v18  ;;  %v4713_v5 = vmul.f32 %v7317_v53, %v8473_v29  ;;  %v3990_v29 = vld [vmem:[%s8711_s9 + $0x38] sm:$0xff] }
 0xa54   :  { %7123 = vmatmul.mubr.msk.f32.vlgmr.msra.gmra.mxu1 %vm708_vm2, %v4714_v4 }
 0xa55   :  { %7116 = vmatmul.mubr.msk.f32.vlgmr.msra.gmra.mxu0 %vm708_vm2, %v4713_v5  ;;  %7133 = vmatpush3.msra.mxu1 %v5117_v55 }
 0xa56   :  { %7126 = vmatpush3.msra.mxu0 %v5038_v54  ;;  %7134 = vmatprep.subr.mxu1 %v7359_v16 }
 0xa57   :  { %7127 = vmatprep.subr.mxu0 %v7359_v16  ;;  %7135 = vmatpush3.msra.mxu1 %v5115_v56 }
 0xa58   :  { %7128 = vmatpush3.msra.mxu0 %v5036_v14  ;;  %7129 = vmatprep.mubr.msk.f32.mxu0 %vm7360_vm1, %v7359_v16 }
 0xa59   :  { %7136 = vmatprep.mubr.msk.f32.mxu1 %vm7360_vm1, %v7359_v16  ;;  %7139 = vmatprep.subr.mxu0 %v7359_v16 }
 0xa5a   :  { %7146 = vmatprep.subr.mxu1 %v7359_v16 }
 0xa5f   :  { %v7319_v6 = vpop.eup %7318  ;;  %v4699_v7 = vpop.xlane.xlu0 %4698 }
 0xa60   :  { %v7321_v8 = vpop.eup %7320  ;;  %7322 = vrcp.f32 %v4699_v7  ;;  %v4716_v9 = vmul.f32 %v7319_v6, %v8482_v38  ;;  %v3994_v38 = vld [vmem:[%s8711_s9 + $0x58] sm:$0xff] }
 0xa61   :  { %v4715_v59 = vmul.f32 %v7321_v8, %v8484_v13  ;;  %v3992_v13 = vld [vmem:[%s8711_s9 + $0x48] sm:$0xff] }
 0xa62   :  { %7137 = vmatmul.mubr.msk.f32.vlgmr.msra.gmra.mxu1 %vm708_vm2, %v4716_v9 }
 0xa63   :  { %v5275_v10 = vpop.permute.xlu0 %5274  ;;  %7130 = vmatmul.mubr.msk.f32.vlgmr.msra.gmra.mxu0 %vm708_vm2, %v4715_v59  ;;  %7150 = vmatprep.mubr.msk.f32.mxu1 %vm7360_vm1, %v7359_v16 }
 0xa64   :  { %7140 = vmatpush3.msra.mxu0 %v5196_v57  ;;  %7147 = vmatpush3.msra.mxu1 %v5275_v10 }
 0xa65   :  { %7141 = vmatprep.subr.mxu0 %v7359_v16  ;;  %7143 = vmatprep.mubr.msk.f32.mxu0 %vm7360_vm1, %v7359_v16 }
 0xa66   :  { %7142 = vmatpush3.msra.mxu0 %v5194_v58  ;;  %7148 = vmatprep.subr.mxu1 %v7359_v16 }
 0xa67   :  { %7153 = vmatprep.subr.mxu0 %v7359_v16 }
 0xa6d   :  { %v7323_v11 = vpop.eup %7322 }
 0xa6e   :  { %v4717_v12 = vmul.f32 %v7323_v11, %v8492_v43  ;;  %v3991_v43 = vld [vmem:[%s8711_s9 + $0x40] sm:$0xff] }
 0xa70   :  { %7144 = vmatmul.mubr.msk.f32.vlgmr.msra.gmra.mxu0 %vm708_vm2, %v4717_v12 }
 0xa71   :  { %7154 = vmatpush3.msra.mxu0 %v3984_v15  ;;  %7157 = vmatprep.mubr.msk.f32.mxu0 %vm7360_vm1, %v7359_v16 }
 0xa72   :  { %7155 = vmatprep.subr.mxu0 %v7359_v16 }
 0xa73   :  { %7156 = vmatpush3.msra.mxu0 %v3983_v17 }
 0xa74   :  { %7167 = vmatprep.subr.mxu0 %v7359_v16 }
 0xa8e   :  { %v4702_v20 = vpop.xlane.xlu1 %4701 }
 0xa8f   :  { %7324 = vrcp.f32 %v4702_v20 }
 0xa92   :  { %v5273_v22 = vpop.permute.xlu1 %5272 }
 0xa93   :  { %7149 = vmatpush3.msra.mxu1 %v5273_v22 }
 0xa94   :  { %7160 = vmatprep.subr.mxu1 %v7359_v16 }
 0xa9c   :  { %v7325_v23 = vpop.eup %7324 }
 0xa9d   :  { %v4718_v24 = vmul.f32 %v7325_v23, %v8499_v48  ;;  %v3996_v48 = vld [vmem:[%s8711_s9 + $0x68] sm:$0xff] }
 0xa9f   :  { %7151 = vmatmul.mubr.msk.f32.vlgmr.msra.gmra.mxu1 %vm708_vm2, %v4718_v24 }
 0xaa0   :  { %7161 = vmatpush3.msra.mxu1 %v3986_v25  ;;  %7164 = vmatprep.mubr.msk.f32.mxu1 %vm7360_vm1, %v7359_v16 }
 0xaa1   :  { %7162 = vmatprep.subr.mxu1 %v7359_v16 }
 0xaa2   :  { %7163 = vmatpush3.msra.mxu1 %v3985_v26 }
 0xaa3   :  { %7174 = vmatprep.subr.mxu1 %v7359_v16 }
 0xb07   :  { %v4873_v27 = vpop.f32.mrf.mxu1 }
 0xb08   :  { %v4794_v33 = vpop.f32.mrf.mxu0  ;;  %7165 = vmatmul.mubr.msk.f32.vlgmr.msra.gmra.mxu1 %vm708_vm2, %v4873_v27 }
 0xb09   :  { %7158 = vmatmul.mubr.msk.f32.vlgmr.msra.gmra.mxu0 %vm708_vm2, %v4794_v33  ;;  %v7110_v31 = vpop.f32.mrf.mxu1  ;;  %7175 = vmatpush3.msra.mxu1 %v3990_v29 }
 0xb0a   :  { %v7103_v36 = vpop.f32.mrf.mxu0  ;;  %7168 = vmatpush3.msra.mxu0 %v3988_v30  ;;  %7176 = vmatprep.subr.mxu1 %v7359_v16 }
 0xb0b   :  { %7169 = vmatprep.subr.mxu0 %v7359_v16  ;;  %7171 = vmatprep.mubr.msk.f32.mxu0 %vm7360_vm1, %v7359_v16  ;;  %v5989_v36 = vld [vmem:[%s8712_s10 + $0x10] sm:$0xff] }
 0xb0c   :  { %7170 = vmatpush3.msra.mxu0 %v3987_v34  ;;  %7177 = vmatpush3.msra.mxu1 %v3989_v35  ;;  %v5990_v35 = vld [vmem:[%s8712_s10 + $0x18] sm:$0xff] }
 0xb0d   :  { %7178 = vmatprep.mubr.msk.f32.mxu1 %vm7360_vm1, %v7359_v16  ;;  %7181 = vmatprep.subr.mxu0 %v7359_v16 }
 0xb0e   :  { %7188 = vmatprep.subr.mxu1 %v7359_v16 }
 0xb14   :  { %v5031_v39 = vpop.f32.mrf.mxu1 }
 0xb15   :  { %v4952_v41 = vpop.f32.mrf.mxu0  ;;  %7179 = vmatmul.mubr.msk.f32.vlgmr.msra.gmra.mxu1 %vm708_vm2, %v5031_v39  ;;  %v5987_v39 = vld [vmem:[%s8712_s10] sm:$0xff] }
 0xb16   :  { %7172 = vmatmul.mubr.msk.f32.vlgmr.msra.gmra.mxu0 %vm708_vm2, %v4952_v41  ;;  %v7124_v42 = vpop.f32.mrf.mxu1  ;;  %7189 = vmatpush3.msra.mxu1 %v3994_v38  ;;  %v5988_v38 = vld [vmem:[%s8712_s10 + $0x8] sm:$0xff] }
 0xb17   :  { %v7117_v44 = vpop.f32.mrf.mxu0  ;;  %7182 = vmatpush3.msra.mxu0 %v3992_v13  ;;  %7190 = vmatprep.subr.mxu1 %v7359_v16 }
 0xb18   :  { %7183 = vmatprep.subr.mxu0 %v7359_v16  ;;  %7185 = vmatprep.mubr.msk.f32.mxu0 %vm7360_vm1, %v7359_v16 }
 0xb19   :  { %7184 = vmatpush3.msra.mxu0 %v3991_v43  ;;  %7191 = vmatpush3.msra.mxu1 %v3993_v40  ;;  %v5977_v43 = vsub.s32 4, %v7487_v28  ;;  %v5983_v40 = vsub.s32 5, %v7487_v28  ;;  %v6104_v28 = vld [vmem:[%s8713_s11 + $0x38] sm:$0xff] }
 0xb1a   :  { %7192 = vmatprep.mubr.msk.f32.mxu1 %vm7360_vm1, %v7359_v16  ;;  %7195 = vmatprep.subr.mxu0 %v7359_v16 }
 0xb1b   :  { %7202 = vmatprep.subr.mxu1 %v7359_v16 }
 0xb22   :  { %v5189_v47 = vpop.f32.mrf.mxu1 }
 0xb23   :  { %v5110_v49 = vpop.f32.mrf.mxu0  ;;  %7193 = vmatmul.mubr.msk.f32.vlgmr.msra.gmra.mxu1 %vm708_vm2, %v5189_v47 }
 0xb24   :  { %7186 = vmatmul.mubr.msk.f32.vlgmr.msra.gmra.mxu0 %vm708_vm2, %v5110_v49  ;;  %v7138_v50 = vpop.f32.mrf.mxu1  ;;  %7203 = vmatpush3.msra.mxu1 %v3998_v46 }
 0xb25   :  { %v7131_v19 = vpop.f32.mrf.mxu0  ;;  %7196 = vmatpush3.msra.mxu0 %v3996_v48  ;;  %7199 = vmatprep.mubr.msk.f32.mxu0 %vm7360_vm1, %v7359_v16 }
 0xb26   :  { %7197 = vmatprep.subr.mxu0 %v7359_v16  ;;  %7204 = vmatprep.subr.mxu1 %v7359_v16 }
 0xb27   :  { %7198 = vmatpush3.msra.mxu0 %v3995_v51  ;;  %7205 = vmatpush3.msra.mxu1 %v3997_v52 }
 0xb28   :  { %7206 = vmatprep.mubr.msk.f32.mxu1 %vm7360_vm1, %v7359_v16  ;;  %v7336_v16 = vld [vmem:[%s8704_s2] sm:$0xff]  ;;  %7209 = vmatprep.subr.mxu0 %v5990_v35 }
 0xb29   :  { %v5944_v1 = vrot.slane %v7336_v16, %v5943_v63  ;;  %v5978_v44 = vrot.slane %v7336_v16, %v5977_v43  ;;  %v5984_v48 = vrot.slane %v7336_v16, %v5983_v40  ;;  %7220 = vmatprep.subr.mxu1 %v6104_v28  ;;  %v6099_v63 = vld [vmem:[%s8713_s11 + $0x10] sm:$0xff] }
 0xb30   :  { %v5268_v54 = vpop.f32.mrf.mxu0 }
 0xb31   :  { %7200 = vmatmul.mubr.msk.f32.vlgmr.msra.gmra.mxu0 %vm708_vm2, %v5268_v54 }
 0xb32   :  { %v7145_v14 = vpop.f32.mrf.mxu0  ;;  %7210 = vmatpush3.msra.mxu0 %v5990_v35 }
 0xb33   :  { %7211 = vmatprep.subr.mxu0 %v5989_v36 }
 0xb34   :  { %7212 = vmatpush3.msra.mxu0 %v5989_v36 }
 0xb35   :  { %7213 = vmatprep.subr.mxu0 %v5988_v38 }
 0xb36   :  { %7214 = vmatpush3.msra.mxu0 %v5988_v38 }
 0xb37   :  { %7215 = vmatprep.subr.mxu0 %v5987_v39 }
 0xb38   :  { %7216 = vmatpush3.msra.mxu0 %v5987_v39 }
 0xb5f   :  { %v5347_v55 = vpop.f32.mrf.mxu1 }
 0xb60   :  { %7207 = vmatmul.mubr.msk.f32.vlgmr.msra.gmra.mxu1 %vm708_vm2, %v5347_v55 }
 0xb61   :  { %v7152_v56 = vpop.f32.mrf.mxu1  ;;  %7221 = vmatpush3.msra.mxu1 %v6104_v28 }
 0xbc8   :  { %v5493_v57 = vpop.f32.mrf.mxu1 }
 0xbc9   :  { %v5420_v58 = vpop.f32.mrf.mxu0 }
 0xbca   :  { %v7166_v61 = vpop.f32.mrf.mxu1  ;;  %v5935_v32 = vadd.f32 %v5493_v57, %v5420_v58  ;;  %v6103_v57 = vld [vmem:[%s8713_s11 + $0x30] sm:$0xff]  ;;  %v6102_v58 = vld [vmem:[%s8713_s11 + $0x28] sm:$0xff] }
 0xbcb   :  { %v7159_v62 = vpop.f32.mrf.mxu0  ;;  %7222 = vmatprep.subr.mxu1 %v6103_v57  ;;  %v6101_v61 = vld [vmem:[%s8713_s11 + $0x20] sm:$0xff] }
 0xbcc   :  { %7223 = vmatpush3.msra.mxu1 %v6103_v57  ;;  %v6100_v62 = vld [vmem:[%s8713_s11 + $0x18] sm:$0xff] }
 0xbcd   :  { %7224 = vmatprep.subr.mxu1 %v6102_v58 }
 0xbce   :  { %7225 = vmatpush3.msra.mxu1 %v6102_v58 }
 0xbcf   :  { %7226 = vmatprep.subr.mxu1 %v6101_v61 }
 0xbd0   :  { %7227 = vmatpush3.msra.mxu1 %v6101_v61 }
 0xbd1   :  { %7228 = vmatprep.subr.mxu1 %v6100_v62 }
 0xbd2   :  { %7229 = vmatpush3.msra.mxu1 %v6100_v62 }
 0xbd3   :  { %7230 = vmatprep.subr.mxu1 %v6099_v63 }
 0xbd4   :  { %7231 = vmatpush3.msra.mxu1 %v6099_v63 }
 0xbd5   :  { %v5639_v45 = vpop.f32.mrf.mxu1 }
 0xbd6   :  { %v5566_v0 = vpop.f32.mrf.mxu0 }
 0xbd7   :  { %v5937_v37 = vadd.f32 %v5935_v32, %v5566_v0  ;;  %v7180_v2 = vpop.f32.mrf.mxu1  ;;  %v6098_v32 = vld [vmem:[%s8713_s11 + $0x8] sm:$0xff]  ;;  %v6315_v0 = vld [vmem:[%s8706_s4] ss:$0 sm:$0xff] }
 0xbd8   :  { %v7173_v3 = vpop.f32.mrf.mxu0  ;;  %7232 = vmatprep.subr.mxu1 %v6098_v32 }
 0xbd9   :  { %v5939_v53 = vadd.f32 %v5937_v37, %v5639_v45  ;;  %v6097_v45 = vld [vmem:[%s8713_s11] sm:$0xff]  ;;  %7233 = vmatpush3.msra.mxu1 %v6098_v32 }
 0xbda   :  { %7234 = vmatprep.subr.mxu1 %v6097_v45 }
 0xbdb   :  { %v5945_v18 = vadd.f32 %v5944_v1, %v5939_v53  ;;  %7235 = vmatpush3.msra.mxu1 %v6097_v45 }
 0xbdd   :  { %v8636_v4 = vadd.f32 %v5945_v18, %v7882_v60 }
 0xbdf   :  { %v5949_v5 = vsel %vm51_vm0, %v8636_v4, 0.0 }
 0xbe0   :  { %5950 = vadd.xlane.f32.xlu0 %v5949_v5 }
 0xbe3   :  { %v5785_v6 = vpop.f32.mrf.mxu1 }
 0xbe4   :  { %v5712_v7 = vpop.f32.mrf.mxu0 }
 0xbe5   :  { %v7194_v8 = vpop.f32.mrf.mxu1  ;;  %v5936_v11 = vadd.f32 %v5785_v6, %v5712_v7 }
 0xbe6   :  { %v7187_v9 = vpop.f32.mrf.mxu0 }
 0xbf1   :  { %v5858_v59 = vpop.f32.mrf.mxu0 }
 0xbf2   :  { %v5938_v12 = vadd.f32 %v5936_v11, %v5858_v59 }
 0xbf3   :  { %v7201_v10 = vpop.f32.mrf.mxu0 }
 0xc20   :  { %v5931_v15 = vpop.f32.mrf.mxu1 }
 0xc21   :  { %v5940_v17 = vadd.f32 %v5938_v12, %v5931_v15 }
 0xc22   :  { %v7208_v20 = vpop.f32.mrf.mxu1 }
 0xc23   :  { %v5946_v22 = vadd.f32 %v5944_v1, %v5940_v17 }
 0xc25   :  { %v8641_v23 = vadd.f32 %v5946_v22, %v7904_v21 }
 0xc27   :  { %v5952_v60 = vsel %vm51_vm0, %v8641_v23, 0.0 }
 0xc28   :  { %5953 = vadd.xlane.f32.xlu1 %v5952_v60 }
 0xc69   :  { %v5951_v24 = vpop.xlane.xlu0 %5950 }
 0xc6a   :  { %v5955_v25 = vmul.f32 0.03125, %v5951_v24 }
 0xc6c   :  { %v5957_v26 = vsub.f32 %v8636_v4, %v5955_v25  ;;  %v6318_v25 = vld [vmem:[%s8704_s2 + $0x8] ss:$0 sm:$0xff] }
 0xc6e   :  { %v5959_v29 = vmul.f32 %v5957_v26, %v5957_v26 }
 0xc70   :  { %v5961_v27 = vsel %vm51_vm0, %v5959_v29, 0.0 }
 0xc71   :  { %5962 = vadd.xlane.f32.xlu0 %v5961_v27 }
 0xcb1   :  { %v5954_v30 = vpop.xlane.xlu1 %5953 }
 0xcb2   :  { %v5956_v33 = vmul.f32 0.03125, %v5954_v30 }
 0xcb4   :  { %v5958_v31 = vsub.f32 %v8641_v23, %v5956_v33 }
 0xcb6   :  { %v5960_v34 = vmul.f32 %v5958_v31, %v5958_v31 }
 0xcb8   :  { %v5964_v21 = vsel %vm51_vm0, %v5960_v34, 0.0 }
 0xcb9   :  { %5965 = vadd.xlane.f32.xlu0 %v5964_v21 }
 0xcfa   :  { %v5963_v13 = vpop.xlane.xlu0 %5962 }
 0xcfb   :  { %v5967_v41 = vmul.f32 0.03125, %v5963_v13 }
 0xcfd   :  { %v5969_v42 = vadd.f32 1e-06, %v5967_v41 }
 0xcff   :  { %7326 = vrsqrt.f32 %v5969_v42 }
 0xd0c   :  { %v7327_v46 = vpop.eup %7326 }
 0xd0d   :  { %v5973_v47 = vmul.f32 %v7327_v46, %v5957_v26 }
 0xd0f   :  { %v5979_v49 = vmul.f32 %v5978_v44, %v5973_v47 }
 0xd11   :  { %v5985_v50 = vadd.f32 %v5984_v48, %v5979_v49 }
 0xd13   :  { %7217 = vmatprep.mubr.msk.f32.mxu0 %vm51_vm0, %v5985_v50 }
 0xd42   :  { %v5966_v51 = vpop.xlane.xlu0 %5965 }
 0xd43   :  { %v5968_v52 = vmul.f32 0.03125, %v5966_v51 }
 0xd45   :  { %v5970_v19 = vadd.f32 1e-06, %v5968_v52 }
 0xd47   :  { %7328 = vrsqrt.f32 %v5970_v19 }
 0xd54   :  { %v7329_v54 = vpop.eup %7328 }
 0xd55   :  { %v5974_v14 = vmul.f32 %v7329_v54, %v5958_v31 }
 0xd57   :  { %v5980_v55 = vmul.f32 %v5978_v44, %v5974_v14 }
 0xd59   :  { %v5986_v56 = vadd.f32 %v5984_v48, %v5980_v55 }
 0xd5b   :  { %7218 = vmatmul.mubr.msk.f32.vlgmr.msra.gmra.mxu0 %vm51_vm0, %v5986_v56 }
 0xe1b   :  { %v7219_v37 = vpop.f32.mrf.mxu0 }
 0xe1c   :  { %v6076_v16 = vadd.f32 %v7219_v37, %v6315_v0 }
 0xe1d   :  { %v6070_v1 = vpop.f32.mrf.mxu0 }
 0xe1e   :  { %v6080_v2 = vmul.f32 %v6076_v16, %v6076_v16  ;;  %v6071_v3 = vadd.f32 %v6315_v0, %v6070_v1 }
 0xe20   :  { %v6082_v53 = vmul.f32 %v6080_v2, %v6076_v16  ;;  %v6079_v18 = vmul.f32 %v6071_v3, %v6071_v3 }
 0xe22   :  { %v6084_v5 = vmul.f32 0.044715, %v6082_v53  ;;  %v6081_v6 = vmul.f32 %v6079_v18, %v6071_v3 }
 0xe24   :  { %v6086_v7 = vadd.f32 %v6084_v5, %v6076_v16  ;;  %v6083_v8 = vmul.f32 0.044715, %v6081_v6 }
 0xe26   :  { %v6088_v9 = vmul.f32 0.7978846, %v6086_v7  ;;  %v6085_v59 = vadd.f32 %v6083_v8, %v6071_v3 }
 0xe28   :  { %7330 = vtanh.f32 %v6088_v9  ;;  %v6087_v10 = vmul.f32 0.7978846, %v6085_v59 }
 0xe2a   :  { %7332 = vtanh.f32 %v6087_v10 }
 0xe35   :  { %v7331_v11 = vpop.eup %7330 }
 0xe36   :  { %v6092_v12 = vadd.f32 1.0, %v7331_v11 }
 0xe37   :  { %v7333_v15 = vpop.eup %7332 }
 0xe38   :  { %v6091_v17 = vadd.f32 1.0, %v7333_v15  ;;  %v6094_v20 = vmul.f32 0.5, %v6092_v12 }
 0xe3a   :  { %v6093_v22 = vmul.f32 0.5, %v6091_v17  ;;  %v6096_v24 = vmul.f32 %v6094_v20, %v6076_v16 }
 0xe3c   :  { %v6095_v60 = vmul.f32 %v6093_v22, %v6071_v3 }
 0xe3e   :  { %7236 = vmatprep.mubr.msk.f32.mxu1 %vm6109_vm5, %v6095_v60 }
 0xe3f   :  { %7237 = vmatmul.mubr.msk.f32.vlgmr.msra.gmra.mxu1 %vm6109_vm5, %v6096_v24 }
 0xeff   :  { %v7238_v26 = vpop.f32.mrf.mxu1 }
 0xf00   :  { %v6188_v29 = vadd.f32 %v7238_v26, %v6318_v25 }
 0xf01   :  { %v6182_v27 = vpop.f32.mrf.mxu1 }
 0xf02   :  { %v6192_v30 = vadd.f32 %v6188_v29, %v8641_v23  ;;  %v6183_v33 = vadd.f32 %v6318_v25, %v6182_v27 }
 0xf04   :  { %6194 = vst.msk [vmem:[#allocation2 + $0x8] sm:$0xff] %vm51_vm0, %v6192_v30  ;;  %v6191_v31 = vadd.f32 %v6183_v33, %v8636_v4 }
 0xf06   :  { %6193 = vst.msk [vmem:[#allocation2] sm:$0xff] %vm51_vm0, %v6191_v31 }
 0xf07   :  { %7348 = shalt.err (!%p7345_p4)
}
 0xf08   :  { %s7364_s2 = smov 128   ;;  %s7365_s17 = smov 8  }
 0xf09   :  { %6206 = dma.vmem_to_hbm [thread:$0]  %s6201_s6, 256, %s8714_s12, [#allocation3], %s7364_s2, %s7364_s2, %s7365_s17  }
 0xf0a   :  { %7357 = dma.done.wait [#allocation3], 256  }
 0xf0b   :  { %7358 = vsyncadd [#allocation3], 4294967040 }
 0xf0c   :  { %6210 = vsyncpa [#allocation3], 1 }

</bundles_post_ra>
